<compile_context>
chip_gen: v7x
topology: tpu7x:2x2x1
jax: 0.10.0
libtpu: 0.0.40
codegen_flags: <defaults>
</compile_context>

<pallas_src>
import functools

import jax
import jax.numpy as jnp
from jax.experimental import pallas as pl
from jax.experimental.pallas import tpu as pltpu


def _det_attn_kernel(x_ref, wq_ref, wkv_ref, wproj_ref, out_ref, *,
                     num_queries, num_heads, compute_dtype):
    Bt, N, C = x_ref.shape            # one block = Bt batch elements, all N tokens
    H = num_heads
    hd = C // H
    nq = num_queries

    x = x_ref[...]                    # (Bt, N, C), already bf16 (cast in wrapper)
    x2 = x.reshape(Bt * N, C)

    # ---- K/V: one fused (Bt*N, C) @ (C, 2C) MXU matmul over ALL tokens ------
    kv = jnp.dot(x2, wkv_ref[...], preferred_element_type=jnp.float32)   # (Bt*N, 2C)
    kv = kv.astype(compute_dtype).reshape(Bt, N, 2 * C)

    # ---- Q: only the first nq det tokens (scale pre-folded into wq) ---------
    xq = x[:, :nq, :].reshape(Bt * nq, C)
    q = jnp.dot(xq, wq_ref[...], preferred_element_type=jnp.float32)     # (Bt*nq, C)
    q = q.astype(compute_dtype).reshape(Bt, nq, C)

    # ---- head split into a single (H*Bt)-batched layout ---------------------
    # Kept as lane-slices + concat (on bf16): general transposes / 2-batch-dim
    # dot_general are not reliably lowered by Mosaic inside Pallas kernels.
    qh = jnp.concatenate(
        [q[:, :, h * hd:(h + 1) * hd] for h in range(H)], axis=0)            # (H*Bt, nq, hd)
    kh = jnp.concatenate(
        [kv[:, :, h * hd:(h + 1) * hd] for h in range(H)], axis=0)           # (H*Bt, N, hd)
    vh = jnp.concatenate(
        [kv[:, :, C + h * hd:C + (h + 1) * hd] for h in range(H)], axis=0)   # (H*Bt, N, hd)

    # ---- batched attention: one matmul per stage, one f32 softmax -----------
    s = jnp.einsum("bqd,bkd->bqk", qh, kh, preferred_element_type=jnp.float32)  # (H*Bt, nq, N)
    s = s - jnp.max(s, axis=-1, keepdims=True)
    e = jnp.exp(s)                                        # unnormalized probs (f32)
    l = jnp.sum(e, axis=-1, keepdims=True)                # (H*Bt, nq, 1)

    # PV with unnormalized probs; normalize the small (nq, hd) output once
    # (flash-style finalize), reciprocal runs on the EUP slot.
    o = jnp.einsum("bqk,bkd->bqd", e.astype(compute_dtype), vh,
                   preferred_element_type=jnp.float32)    # (H*Bt, nq, hd) f32
    o = o * pl.reciprocal(l, approx=True)
    o = o.astype(compute_dtype)

    # ---- merge heads back into channels, full-width output projection -------
    o_cat = jnp.concatenate(
        [o[h * Bt:(h + 1) * Bt].reshape(Bt * nq, hd) for h in range(H)], axis=-1)  # (Bt*nq, C)
    y = jnp.dot(o_cat, wproj_ref[...], preferred_element_type=jnp.float32)          # (Bt*nq, C)
    out_ref[...] = y.reshape(Bt, nq, C).astype(out_ref.dtype)                        # lane-dense store


def _estimate_vmem_bytes(bt, N, C, nq, H, act_bytes, out_bytes):
    """Rough per-grid-step VMEM footprint: pipeline buffers + main temporaries."""
    xb = 2 * bt * N * C * act_bytes              # double-buffered x block
    wb = 2 * 4 * C * C * act_bytes               # w_q + w_kv + w_proj, double-buffered
    ob = 2 * bt * nq * C * out_bytes             # double-buffered output block
    kv = bt * N * 2 * C * (4 + 2 * act_bytes)    # f32 accum + bf16 copy + head-split copy
    qq = bt * nq * C * (4 + 2 * act_bytes)
    att = bt * H * nq * N * (2 * 4 + act_bytes)  # s, e (f32) + bf16 copy of e
    oo = bt * nq * C * (4 + 2 * act_bytes)
    return int(1.4 * (xb + wb + ob + kv + qq + att + oo))


def _pick_batch_block(B, N, C, nq, H, act_bytes, out_bytes, budget_bytes):
    """Largest divisor bt of B whose estimated footprint fits `budget_bytes`.

    v5e/v6e have one TensorCore per chip, so the grid is a serial loop: the best
    choice is the single biggest block (bt = B) — largest MXU M dimension, no
    ~0.35us/step overhead.  On v7x (2 TCs) a >=2-step "parallel" grid only pays
    once bt*N >= ~256 rows per core; at small shapes a single step is still
    best, and the split kicks in automatically when VMEM forces bt < B.
    """
    for bt in range(B, 0, -1):
        if B % bt == 0 and _estimate_vmem_bytes(
                bt, N, C, nq, H, act_bytes, out_bytes) <= budget_bytes:
            return bt
    return 1


def det_attn(x, params, *, num_queries, num_heads,
             compute_dtype=jnp.bfloat16, vmem_budget_bytes=44 * 1024 * 1024):
    """Pallas TPU forward of DetAttn (eval mode, qkv_bias=False, dropout=0)."""
    B, N, C = x.shape
    assert C % num_heads == 0, "dim must be divisible by num_heads"
    hd = C // num_heads
    scale = hd ** (-0.5)

    act_bytes = jnp.dtype(compute_dtype).itemsize
    out_bytes = jnp.dtype(x.dtype).itemsize
    bt = _pick_batch_block(B, N, C, num_queries, num_heads,
                           act_bytes, out_bytes, vmem_budget_bytes)

    # One-time weight prep (outside the kernel):
    #  * attention scale folded into the Q weight columns,
    #  * K and V fused into a single (C, 2C) matrix,
    #  * MXU operands fed as bf16 (accumulation stays f32 in-kernel).
    w_q = (params["w_q"] * scale).astype(compute_dtype)                                 # (C, C)
    w_kv = jnp.concatenate([params["w_k"], params["w_v"]], axis=1).astype(compute_dtype)  # (C, 2C)
    w_proj = params["w_proj"].astype(compute_dtype)                                     # (C, C)

    # Stream activations in bf16: halves HBM<->VMEM bytes for the only large
    # streamed operand (identical rounding to casting inside the kernel).
    x_in = x.astype(compute_dtype)

    kernel = functools.partial(
        _det_attn_kernel,
        num_queries=num_queries, num_heads=num_heads, compute_dtype=compute_dtype)

    return pl.pallas_call(
        kernel,
        out_shape=jax.ShapeDtypeStruct((B, num_queries, C), x.dtype),
        grid=(B // bt,),
        in_specs=[
            pl.BlockSpec((bt, N, C), lambda b: (b, 0, 0)),    # x: bt batches per step
            pl.BlockSpec((C, C), lambda b: (0, 0)),           # w_q   (grid-invariant, resident)
            pl.BlockSpec((C, 2 * C), lambda b: (0, 0)),       # w_kv  (grid-invariant, resident)
            pl.BlockSpec((C, C), lambda b: (0, 0)),           # w_proj
        ],
        out_specs=pl.BlockSpec((bt, num_queries, C), lambda b: (b, 0, 0)),
        compiler_params=pltpu.CompilerParams(
            dimension_semantics=("parallel",),                # 2-TC split when grid > 1 (v7x)
            # <= ~48 MiB keeps headroom under v7x's 64 MiB VMEM and is far
            # below the 128 MiB available on v5e/v6e.
            vmem_limit_bytes=48 * 1024 * 1024,
        ),
    )(x_in, w_q, w_kv, w_proj)


def det_attn_reference(x, params, *, num_queries, num_heads):
    """Pure-JAX f32 mirror of PyTorch DetAttn.forward (eval, qkv_bias=False, drop=0)."""
    x = x.astype(jnp.float32)
    B, N, C = x.shape
    hd = C // num_heads
    scale = hd ** (-0.5)
    q = (x[:, :num_queries] @ params["w_q"]).reshape(
        B, num_queries, num_heads, hd).transpose(0, 2, 1, 3)
    k = (x @ params["w_k"]).reshape(B, N, num_heads, hd).transpose(0, 2, 1, 3)
    v = (x @ params["w_v"]).reshape(B, N, num_heads, hd).transpose(0, 2, 1, 3)
    attn = jax.nn.softmax((q * scale) @ jnp.swapaxes(k, -2, -1), axis=-1)
    x_det = (attn @ v).transpose(0, 2, 1, 3).reshape(B, num_queries, C)
    return x_det @ params["w_proj"]


def make_params(key, dim, dtype=jnp.float32, init_std=0.05):
    """Linear weights stored pre-transposed as (in, out) == nn.Linear.weight.T."""
    ks = jax.random.split(key, 4)
    init = lambda k: jax.random.normal(k, (dim, dim), dtype) * init_std
    return {"w_q": init(ks[0]), "w_k": init(ks[1]),
            "w_v": init(ks[2]), "w_proj": init(ks[3])}


if __name__ == "__main__":
    # Small but TPU-friendly shapes: C multiple of 128 keeps stores lane-dense.
    B, N, C = 4, 32, 128          # N = num_queries det tokens + 24 patch tokens
    num_queries = 8
    num_heads = 8

    key = jax.random.PRNGKey(0)
    kx, kp = jax.random.split(key)
    x = jax.random.normal(kx, (B, N, C), jnp.float32)
    params = make_params(kp, C)

    out = det_attn(x, params, num_queries=num_queries, num_heads=num_heads)
    out = jax.block_until_ready(out)

    ref = det_attn_reference(x, params, num_queries=num_queries, num_heads=num_heads)
    assert out.shape == (B, num_queries, C)
    err = float(jnp.max(jnp.abs(out - ref)))
    # Tolerance accounts for bf16 MXU operands (f32 accumulation) and the
    # approx EUP reciprocal vs the pure-f32 reference.
    assert jnp.allclose(out, ref, atol=2e-2, rtol=5e-2), f"max abs err {err}"

    print("KERNEL_OK")
</pallas_src>

<mosaic_0001>
module attributes {stable_mosaic.version = 11 : i64} {
  func.func @_det_attn_kernel(%arg0: i32, %arg1: memref<4x32x128xbf16, #tpu.memory_space<vmem>>, %arg2: memref<128x128xbf16, #tpu.memory_space<vmem>>, %arg3: memref<128x256xbf16, #tpu.memory_space<vmem>>, %arg4: memref<128x128xbf16, #tpu.memory_space<vmem>>, %arg5: memref<4x8x128xf32, #tpu.memory_space<vmem>>) attributes {dimension_semantics = [#tpu.dimension_semantics<parallel>], iteration_bounds = array<i64: 1>, scalar_prefetch = 0 : i64, scratch_operands = 0 : i64, tpu.core_type = #tpu.core_type<tc>, window_params = [{transform_indices = @transform_0, window_bounds = array<i64: 4, 32, 128>}, {pipeline_mode = #tpu.pipeline_mode<synchronous>, transform_indices = @transform_1, window_bounds = array<i64: 128, 128>}, {pipeline_mode = #tpu.pipeline_mode<synchronous>, transform_indices = @transform_2, window_bounds = array<i64: 128, 256>}, {pipeline_mode = #tpu.pipeline_mode<synchronous>, transform_indices = @transform_3, window_bounds = array<i64: 128, 128>}, {transform_indices = @transform_4, window_bounds = array<i64: 4, 8, 128>}]} {
    %c0 = arith.constant 0 : index
    %c0_0 = arith.constant 0 : index
    %c0_1 = arith.constant 0 : index
    %0 = vector.load %arg1[%c0, %c0_0, %c0_1] : memref<4x32x128xbf16, #tpu.memory_space<vmem>>, vector<4x32x128xbf16>
    %1 = vector.shape_cast %0 : vector<4x32x128xbf16> to vector<128x128xbf16>
    %c0_2 = arith.constant 0 : index
    %c0_3 = arith.constant 0 : index
    %2 = vector.load %arg3[%c0_2, %c0_3] : memref<128x256xbf16, #tpu.memory_space<vmem>>, vector<128x256xbf16>
    %cst = arith.constant dense<0.000000e+00> : vector<128x256xf32>
    %3 = tpu.matmul %1, %2, %cst {dimension_numbers = #tpu.dot_dimension_numbers<[1], [0], [0], [1], [0, 0, 1, 1], [], []>} : vector<128x128xbf16>, vector<128x256xbf16>, vector<128x256xf32> -> vector<128x256xf32>
    %4 = arith.truncf %3 : vector<128x256xf32> to vector<128x256xbf16>
    %5 = vector.shape_cast %4 : vector<128x256xbf16> to vector<4x32x256xbf16>
    %6 = vector.extract_strided_slice %0 {offsets = [0, 0, 0], sizes = [4, 8, 128], strides = [1, 1, 1]} : vector<4x32x128xbf16> to vector<4x8x128xbf16>
    %7 = vector.shape_cast %6 : vector<4x8x128xbf16> to vector<32x128xbf16>
    %c0_4 = arith.constant 0 : index
    %c0_5 = arith.constant 0 : index
    %8 = vector.load %arg2[%c0_4, %c0_5] : memref<128x128xbf16, #tpu.memory_space<vmem>>, vector<128x128xbf16>
    %cst_6 = arith.constant dense<0.000000e+00> : vector<32x128xf32>
    %9 = tpu.matmul %7, %8, %cst_6 {dimension_numbers = #tpu.dot_dimension_numbers<[1], [0], [0], [1], [0, 0, 1, 1], [], []>} : vector<32x128xbf16>, vector<128x128xbf16>, vector<32x128xf32> -> vector<32x128xf32>
    %10 = arith.truncf %9 : vector<32x128xf32> to vector<32x128xbf16>
    %11 = vector.shape_cast %10 : vector<32x128xbf16> to vector<4x8x128xbf16>
    %12 = vector.extract_strided_slice %11 {offsets = [0, 0, 0], sizes = [4, 8, 16], strides = [1, 1, 1]} : vector<4x8x128xbf16> to vector<4x8x16xbf16>
    %13 = vector.extract_strided_slice %11 {offsets = [0, 0, 16], sizes = [4, 8, 16], strides = [1, 1, 1]} : vector<4x8x128xbf16> to vector<4x8x16xbf16>
    %14 = vector.extract_strided_slice %11 {offsets = [0, 0, 32], sizes = [4, 8, 16], strides = [1, 1, 1]} : vector<4x8x128xbf16> to vector<4x8x16xbf16>
    %15 = vector.extract_strided_slice %11 {offsets = [0, 0, 48], sizes = [4, 8, 16], strides = [1, 1, 1]} : vector<4x8x128xbf16> to vector<4x8x16xbf16>
    %16 = vector.extract_strided_slice %11 {offsets = [0, 0, 64], sizes = [4, 8, 16], strides = [1, 1, 1]} : vector<4x8x128xbf16> to vector<4x8x16xbf16>
    %17 = vector.extract_strided_slice %11 {offsets = [0, 0, 80], sizes = [4, 8, 16], strides = [1, 1, 1]} : vector<4x8x128xbf16> to vector<4x8x16xbf16>
    %18 = vector.extract_strided_slice %11 {offsets = [0, 0, 96], sizes = [4, 8, 16], strides = [1, 1, 1]} : vector<4x8x128xbf16> to vector<4x8x16xbf16>
    %19 = vector.extract_strided_slice %11 {offsets = [0, 0, 112], sizes = [4, 8, 16], strides = [1, 1, 1]} : vector<4x8x128xbf16> to vector<4x8x16xbf16>
    %20 = tpu.concatenate %12, %13, %14, %15, %16, %17, %18, %19 in 0 : vector<4x8x16xbf16>, vector<4x8x16xbf16>, vector<4x8x16xbf16>, vector<4x8x16xbf16>, vector<4x8x16xbf16>, vector<4x8x16xbf16>, vector<4x8x16xbf16>, vector<4x8x16xbf16> -> vector<32x8x16xbf16>
    %21 = vector.extract_strided_slice %5 {offsets = [0, 0, 0], sizes = [4, 32, 16], strides = [1, 1, 1]} : vector<4x32x256xbf16> to vector<4x32x16xbf16>
    %22 = vector.extract_strided_slice %5 {offsets = [0, 0, 16], sizes = [4, 32, 16], strides = [1, 1, 1]} : vector<4x32x256xbf16> to vector<4x32x16xbf16>
    %23 = vector.extract_strided_slice %5 {offsets = [0, 0, 32], sizes = [4, 32, 16], strides = [1, 1, 1]} : vector<4x32x256xbf16> to vector<4x32x16xbf16>
    %24 = vector.extract_strided_slice %5 {offsets = [0, 0, 48], sizes = [4, 32, 16], strides = [1, 1, 1]} : vector<4x32x256xbf16> to vector<4x32x16xbf16>
    %25 = vector.extract_strided_slice %5 {offsets = [0, 0, 64], sizes = [4, 32, 16], strides = [1, 1, 1]} : vector<4x32x256xbf16> to vector<4x32x16xbf16>
    %26 = vector.extract_strided_slice %5 {offsets = [0, 0, 80], sizes = [4, 32, 16], strides = [1, 1, 1]} : vector<4x32x256xbf16> to vector<4x32x16xbf16>
    %27 = vector.extract_strided_slice %5 {offsets = [0, 0, 96], sizes = [4, 32, 16], strides = [1, 1, 1]} : vector<4x32x256xbf16> to vector<4x32x16xbf16>
    %28 = vector.extract_strided_slice %5 {offsets = [0, 0, 112], sizes = [4, 32, 16], strides = [1, 1, 1]} : vector<4x32x256xbf16> to vector<4x32x16xbf16>
    %29 = tpu.concatenate %21, %22, %23, %24, %25, %26, %27, %28 in 0 : vector<4x32x16xbf16>, vector<4x32x16xbf16>, vector<4x32x16xbf16>, vector<4x32x16xbf16>, vector<4x32x16xbf16>, vector<4x32x16xbf16>, vector<4x32x16xbf16>, vector<4x32x16xbf16> -> vector<32x32x16xbf16>
    %30 = vector.extract_strided_slice %5 {offsets = [0, 0, 128], sizes = [4, 32, 16], strides = [1, 1, 1]} : vector<4x32x256xbf16> to vector<4x32x16xbf16>
    %31 = vector.extract_strided_slice %5 {offsets = [0, 0, 144], sizes = [4, 32, 16], strides = [1, 1, 1]} : vector<4x32x256xbf16> to vector<4x32x16xbf16>
    %32 = vector.extract_strided_slice %5 {offsets = [0, 0, 160], sizes = [4, 32, 16], strides = [1, 1, 1]} : vector<4x32x256xbf16> to vector<4x32x16xbf16>
    %33 = vector.extract_strided_slice %5 {offsets = [0, 0, 176], sizes = [4, 32, 16], strides = [1, 1, 1]} : vector<4x32x256xbf16> to vector<4x32x16xbf16>
    %34 = vector.extract_strided_slice %5 {offsets = [0, 0, 192], sizes = [4, 32, 16], strides = [1, 1, 1]} : vector<4x32x256xbf16> to vector<4x32x16xbf16>
    %35 = vector.extract_strided_slice %5 {offsets = [0, 0, 208], sizes = [4, 32, 16], strides = [1, 1, 1]} : vector<4x32x256xbf16> to vector<4x32x16xbf16>
    %36 = vector.extract_strided_slice %5 {offsets = [0, 0, 224], sizes = [4, 32, 16], strides = [1, 1, 1]} : vector<4x32x256xbf16> to vector<4x32x16xbf16>
    %37 = vector.extract_strided_slice %5 {offsets = [0, 0, 240], sizes = [4, 32, 16], strides = [1, 1, 1]} : vector<4x32x256xbf16> to vector<4x32x16xbf16>
    %38 = tpu.concatenate %30, %31, %32, %33, %34, %35, %36, %37 in 0 : vector<4x32x16xbf16>, vector<4x32x16xbf16>, vector<4x32x16xbf16>, vector<4x32x16xbf16>, vector<4x32x16xbf16>, vector<4x32x16xbf16>, vector<4x32x16xbf16>, vector<4x32x16xbf16> -> vector<32x32x16xbf16>
    "tpu.trace_start"() <{level = 10 : i32, message = "bqd,bkd->bqk"}> : () -> ()
    %cst_7 = arith.constant dense<0.000000e+00> : vector<32x8x32xf32>
    %39 = tpu.matmul %20, %29, %cst_7 {dimension_numbers = #tpu.dot_dimension_numbers<[2], [2], [1], [1], [0, 0, 0, 1, 1, 1], [0], [0]>} : vector<32x8x16xbf16>, vector<32x32x16xbf16>, vector<32x8x32xf32> -> vector<32x8x32xf32>
    "tpu.trace_stop"() : () -> ()
    %cst_8 = arith.constant dense<0xFF800000> : vector<32x8xf32>
    %40 = vector.multi_reduction <maximumf>, %39, %cst_8 [2] : vector<32x8x32xf32> to vector<32x8xf32>
    %41 = vector.shape_cast %40 : vector<32x8xf32> to vector<32x8x1xf32>
    %42 = vector.broadcast %41 : vector<32x8x1xf32> to vector<32x8x32xf32>
    %43 = arith.subf %39, %42 : vector<32x8x32xf32>
    %44 = math.exp %43 : vector<32x8x32xf32>
    %cst_9 = arith.constant dense<0.000000e+00> : vector<32x8xf32>
    %45 = vector.multi_reduction <add>, %44, %cst_9 [2] : vector<32x8x32xf32> to vector<32x8xf32>
    %46 = vector.shape_cast %45 : vector<32x8xf32> to vector<32x8x1xf32>
    %47 = arith.truncf %44 : vector<32x8x32xf32> to vector<32x8x32xbf16>
    "tpu.trace_start"() <{level = 10 : i32, message = "bqk,bkd->bqd"}> : () -> ()
    %cst_10 = arith.constant dense<0.000000e+00> : vector<32x8x16xf32>
    %48 = tpu.matmul %47, %38, %cst_10 {dimension_numbers = #tpu.dot_dimension_numbers<[2], [1], [1], [2], [0, 0, 0, 1, 1, 2], [0], [0]>} : vector<32x8x32xbf16>, vector<32x32x16xbf16>, vector<32x8x16xf32> -> vector<32x8x16xf32>
    "tpu.trace_stop"() : () -> ()
    %49 = tpu.reciprocal %46 {approx = true} : vector<32x8x1xf32> -> vector<32x8x1xf32>
    %50 = vector.broadcast %49 : vector<32x8x1xf32> to vector<32x8x16xf32>
    %51 = arith.mulf %48, %50 : vector<32x8x16xf32>
    %52 = arith.truncf %51 : vector<32x8x16xf32> to vector<32x8x16xbf16>
    %53 = vector.extract_strided_slice %52 {offsets = [0, 0, 0], sizes = [4, 8, 16], strides = [1, 1, 1]} : vector<32x8x16xbf16> to vector<4x8x16xbf16>
    %54 = vector.shape_cast %53 : vector<4x8x16xbf16> to vector<32x16xbf16>
    %55 = vector.extract_strided_slice %52 {offsets = [4, 0, 0], sizes = [4, 8, 16], strides = [1, 1, 1]} : vector<32x8x16xbf16> to vector<4x8x16xbf16>
    %56 = vector.shape_cast %55 : vector<4x8x16xbf16> to vector<32x16xbf16>
    %57 = vector.extract_strided_slice %52 {offsets = [8, 0, 0], sizes = [4, 8, 16], strides = [1, 1, 1]} : vector<32x8x16xbf16> to vector<4x8x16xbf16>
    %58 = vector.shape_cast %57 : vector<4x8x16xbf16> to vector<32x16xbf16>
    %59 = vector.extract_strided_slice %52 {offsets = [12, 0, 0], sizes = [4, 8, 16], strides = [1, 1, 1]} : vector<32x8x16xbf16> to vector<4x8x16xbf16>
    %60 = vector.shape_cast %59 : vector<4x8x16xbf16> to vector<32x16xbf16>
    %61 = vector.extract_strided_slice %52 {offsets = [16, 0, 0], sizes = [4, 8, 16], strides = [1, 1, 1]} : vector<32x8x16xbf16> to vector<4x8x16xbf16>
    %62 = vector.shape_cast %61 : vector<4x8x16xbf16> to vector<32x16xbf16>
    %63 = vector.extract_strided_slice %52 {offsets = [20, 0, 0], sizes = [4, 8, 16], strides = [1, 1, 1]} : vector<32x8x16xbf16> to vector<4x8x16xbf16>
    %64 = vector.shape_cast %63 : vector<4x8x16xbf16> to vector<32x16xbf16>
    %65 = vector.extract_strided_slice %52 {offsets = [24, 0, 0], sizes = [4, 8, 16], strides = [1, 1, 1]} : vector<32x8x16xbf16> to vector<4x8x16xbf16>
    %66 = vector.shape_cast %65 : vector<4x8x16xbf16> to vector<32x16xbf16>
    %67 = vector.extract_strided_slice %52 {offsets = [28, 0, 0], sizes = [4, 8, 16], strides = [1, 1, 1]} : vector<32x8x16xbf16> to vector<4x8x16xbf16>
    %68 = vector.shape_cast %67 : vector<4x8x16xbf16> to vector<32x16xbf16>
    %69 = tpu.concatenate %54, %56, %58, %60, %62, %64, %66, %68 in 1 : vector<32x16xbf16>, vector<32x16xbf16>, vector<32x16xbf16>, vector<32x16xbf16>, vector<32x16xbf16>, vector<32x16xbf16>, vector<32x16xbf16>, vector<32x16xbf16> -> vector<32x128xbf16>
    %c0_11 = arith.constant 0 : index
    %c0_12 = arith.constant 0 : index
    %70 = vector.load %arg4[%c0_11, %c0_12] : memref<128x128xbf16, #tpu.memory_space<vmem>>, vector<128x128xbf16>
    %cst_13 = arith.constant dense<0.000000e+00> : vector<32x128xf32>
    %71 = tpu.matmul %69, %70, %cst_13 {dimension_numbers = #tpu.dot_dimension_numbers<[1], [0], [0], [1], [0, 0, 1, 1], [], []>} : vector<32x128xbf16>, vector<128x128xbf16>, vector<32x128xf32> -> vector<32x128xf32>
    %72 = vector.shape_cast %71 : vector<32x128xf32> to vector<4x8x128xf32>
    %c0_14 = arith.constant 0 : index
    %c0_15 = arith.constant 0 : index
    %c0_16 = arith.constant 0 : index
    %73 = vector.load %arg5[%c0_14, %c0_15, %c0_16] : memref<4x8x128xf32, #tpu.memory_space<vmem>>, vector<4x8x128xf32>
    tpu.vector_store %arg5[%c0_14, %c0_15, %c0_16], %72 {strides = array<i32>} : memref<4x8x128xf32, #tpu.memory_space<vmem>>, vector<4x8x128xf32>,
    return
  }
  func.func @transform_0(%arg0: i32) -> (i32, i32, i32) {
    %c0_i32 = arith.constant 0 : i32
    %c0_i32_0 = arith.constant 0 : i32
    %c0_i32_1 = arith.constant 0 : i32
    return %arg0, %c0_i32, %c0_i32_0 : i32, i32, i32
  }
  func.func @transform_1(%arg0: i32) -> (i32, i32) {
    %c0_i32 = arith.constant 0 : i32
    %c0_i32_0 = arith.constant 0 : i32
    %c0_i32_1 = arith.constant 0 : i32
    return %c0_i32, %c0_i32_0 : i32, i32
  }
  func.func @transform_2(%arg0: i32) -> (i32, i32) {
    %c0_i32 = arith.constant 0 : i32
    %c0_i32_0 = arith.constant 0 : i32
    %c0_i32_1 = arith.constant 0 : i32
    return %c0_i32, %c0_i32_0 : i32, i32
  }
  func.func @transform_3(%arg0: i32) -> (i32, i32) {
    %c0_i32 = arith.constant 0 : i32
    %c0_i32_0 = arith.constant 0 : i32
    %c0_i32_1 = arith.constant 0 : i32
    return %c0_i32, %c0_i32_0 : i32, i32
  }
  func.func @transform_4(%arg0: i32) -> (i32, i32, i32) {
    %c0_i32 = arith.constant 0 : i32
    %c0_i32_0 = arith.constant 0 : i32
    %c0_i32_1 = arith.constant 0 : i32
    return %arg0, %c0_i32, %c0_i32_0 : i32, i32, i32
  }
}

</mosaic_0001>

<bundles_post_ra>
// kernel: tpu_custom_call.1
= control target key start
LH: loop header
LB: loop body
LE: loop exit
PB: predicated region body
PF: predicated region fallthrough
CT: control target
= control target key end

     0   :  { %9 = vsyncpa [#allocation3], 0  ;;  %s7207_s0 = inlined_call_operand.hbm [shape: bf16[4,32,128], index: 0, kind: input, shape index: {}]   ;;  %s7208_s1 = inlined_call_operand.hbm [shape: bf16[128,128], index: 1, kind: input, shape index: {}]   ;;  %s7209_s2 = inlined_call_operand.hbm [shape: bf16[128,256], index: 2, kind: input, shape index: {}]   ;;  %s7210_s3 = inlined_call_operand.hbm [shape: bf16[128,128], index: 3, kind: input, shape index: {}]   ;;  %s7211_s4 = inlined_call_operand.hbm [shape: f32[4,8,128], index: 4, kind: output, shape index: {}]  }
   0x1   :  { %10 = vsyncpa [#allocation6], 0 }
   0x2   :  { %11 = vsyncpa [#allocation9], 0 }
   0x3   :  { %12 = vsyncpa [#allocation4], 0  ;;  %s5711_s15 = smov [#allocation5]   ;;  %s5712_s17 = smov [#allocation2]  }
   0x4   :  { %s30_s16 = sshll.u32 %s5711_s15, 4  ;;  %s18_s18 = sshll.u32 %s5712_s17, 4  ;;  %s31_s16 = int_to_ptr.vmem [resolvable:$true] %s30_s16  ;;  %s5754_s18 = int_to_ptr.vmem [resolvable:$true] %s18_s18 }
   0x5   :  { %s5593_s21 = scalar_lea.hbm %s7208_s1, 1024 }
   0x6   :  { %p5594_p0 = scmp.ne.s32.totalorder %s7208_s1, %s5593_s21  ;;  %p5597_p1 = scmp.lt.u32.totalorder %s5593_s21, %s7208_s1 }
   0x8   :  { %p5599_p2 = pnand %p5597_p1, %p5594_p0 }
   0xa   :  { %5602 = shalt.err (!%p5599_p2)
}
   0xb   :  { %s5603_s26 = scalar_lea.vmem %s31_s16, 1024  ;;  %p5608_p4 = scmp.lt.s32.totalorder %s31_s16, %s31_s16 }
   0xc   :  { %p5604_p3 = scmp.ne.s32.totalorder %s31_s16, %s5603_s26  ;;  %p5609_p5 = scmp.lt.s32.totalorder %s5603_s26, %s5603_s26 }
   0xe   :  { %p5610_p6 = por %p5609_p5, %p5608_p4 }
  0x10   :  { %p5611_p7 = pnand %p5610_p6, %p5604_p3 }
  0x12   :  { %5614 = shalt.err (!%p5611_p7)
}
  0x13   :  { %s5713_s27 = smov 64   ;;  %s5714_s28 = smov 4  }
  0x14   :  { %36 = dma.hbm_to_vmem [thread:$0]  %s7208_s1, 1024, %s31_s16, [#allocation6], %s5713_s27, %s5713_s27, %s5714_s28  }
  0x15   :  { %s5615_s7 = scalar_lea.hbm %s7207_s0, 1024 }
  0x16   :  { %p5616_p8 = scmp.ne.s32.totalorder %s7207_s0, %s5615_s7  ;;  %p5619_p9 = scmp.lt.u32.totalorder %s5615_s7, %s7207_s0 }
  0x18   :  { %p5621_p10 = pnand %p5619_p9, %p5616_p8 }
  0x1a   :  { %5624 = shalt.err (!%p5621_p10)
}
  0x1b   :  { %s5625_s12 = scalar_lea.vmem %s5754_s18, 1024  ;;  %p5630_p12 = scmp.lt.s32.totalorder %s5754_s18, %s5754_s18 }
  0x1c   :  { %p5626_p11 = scmp.ne.s32.totalorder %s5754_s18, %s5625_s12  ;;  %p5631_p13 = scmp.lt.s32.totalorder %s5625_s12, %s5625_s12 }
  0x1e   :  { %p5632_p0 = por %p5631_p13, %p5630_p12 }
  0x20   :  { %p5633_p1 = pnand %p5632_p0, %p5626_p11 }
  0x22   :  { %5636 = shalt.err (!%p5633_p1)
}
  0x23   :  { %24 = dma.hbm_to_vmem [thread:$0]  %s7207_s0, 1024, %s5754_s18, [#allocation3], %s5713_s27, %s5713_s27, %s5714_s28  }
  0x24   :  { %s5715_s14 = smov [#allocation7]   ;;  %s5637_s19 = scalar_lea.hbm %s7209_s2, 2048 }
  0x25   :  { %s42_s15 = sshll.u32 %s5715_s14, 4  ;;  %p5638_p2 = scmp.ne.s32.totalorder %s7209_s2, %s5637_s19  ;;  %s43_s15 = int_to_ptr.vmem [resolvable:$true] %s42_s15 }
  0x26   :  { %p5641_p3 = scmp.lt.u32.totalorder %s5637_s19, %s7209_s2 }
  0x28   :  { %p5643_p4 = pnand %p5641_p3, %p5638_p2 }
  0x2a   :  { %5646 = shalt.err (!%p5643_p4)
}
  0x2b   :  { %s5647_s24 = scalar_lea.vmem %s43_s15, 2048  ;;  %p5652_p6 = scmp.lt.s32.totalorder %s43_s15, %s43_s15 }
  0x2c   :  { %p5648_p5 = scmp.ne.s32.totalorder %s43_s15, %s5647_s24  ;;  %p5653_p7 = scmp.lt.s32.totalorder %s5647_s24, %s5647_s24 }
  0x2e   :  { %p5654_p8 = por %p5653_p7, %p5652_p6 }
  0x30   :  { %p5655_p9 = pnand %p5654_p8, %p5648_p5 }
  0x32   :  { %5658 = shalt.err (!%p5655_p9)
}
  0x33   :  { %s5716_s0 = smov 128   ;;  %s5717_s18 = smov 8  }
  0x34   :  { %48 = dma.hbm_to_vmem [thread:$0]  %s7209_s2, 2048, %s43_s15, [#allocation6], %s5716_s0, %s5716_s0, %s5717_s18  }
  0x35   :  { %s5718_s29 = smov [#allocation8]   ;;  %s5659_s7 = scalar_lea.hbm %s7210_s3, 1024 }
  0x36   :  { %s54_s30 = sshll.u32 %s5718_s29, 4  ;;  %p5660_p10 = scmp.ne.s32.totalorder %s7210_s3, %s5659_s7  ;;  %s55_s30 = int_to_ptr.vmem [resolvable:$true] %s54_s30 }
  0x37   :  { %p5663_p11 = scmp.lt.u32.totalorder %s5659_s7, %s7210_s3 }
  0x39   :  { %p5665_p12 = pnand %p5663_p11, %p5660_p10 }
  0x3b   :  { %5668 = shalt.err (!%p5665_p12)
}
  0x3c   :  { %s5669_s12 = scalar_lea.vmem %s55_s30, 1024  ;;  %p5674_p0 = scmp.lt.s32.totalorder %s55_s30, %s55_s30 }
  0x3d   :  { %p5670_p13 = scmp.ne.s32.totalorder %s55_s30, %s5669_s12  ;;  %p5675_p1 = scmp.lt.s32.totalorder %s5669_s12, %s5669_s12 }
  0x3f   :  { %p5676_p2 = por %p5675_p1, %p5674_p0 }
  0x41   :  { %p5677_p3 = pnand %p5676_p2, %p5670_p13 }
  0x43   :  { %5680 = shalt.err (!%p5677_p3)
}
  0x44   :  { %60 = dma.hbm_to_vmem [thread:$0]  %s7210_s3, 1024, %s55_s30, [#allocation9], %s5713_s27, %s5713_s27, %s5714_s28  }
  0x45   :  { %5703 = dma.done.wait [#allocation3], 1024  }
  0x46   :  { %5704 = vsyncadd [#allocation3], 4294966272 }
  0x47   :  { %5705 = dma.done.wait [#allocation6], 3072  }
  0x48   :  { %5706 = vsyncadd [#allocation6], 4294964224 }
  0x49   :  { %5707 = dma.done.wait [#allocation9], 1024  }
  0x4a   :  { %5708 = vsyncadd [#allocation9], 4294966272  ;;  %v5719_v0 = vmov 0   ;;  %v5415_v1 = vld [vmem:[#allocation7 + $0x4] ss:$8 sps:$4 sm:$0xff]   ;;  %v5438_v12 = vld [vmem:[#allocation5 + $0x10] sm:$0xff]  }
  0x4b   :  { %266 = vmatprep.mubr.bf16.mxu0 %v5719_v0  ;;  %v5417_v2 = vld [vmem:[#allocation7] ss:$8 sps:$4 sm:$0xff]   ;;  %234 = vmatprep.subr.bf16.mxu0 %v5415_v1  ;;  %v5418_v3 = vld [vmem:[#allocation7 + $0x14] ss:$8 sps:$4 sm:$0xff]   ;;  %v5420_v4 = vld [vmem:[#allocation7 + $0x10] ss:$8 sps:$4 sm:$0xff]  }
  0x4c   :  { %235 = vmatpush1.bf16.msra.mxu0 %v5417_v2  ;;  %v5421_v5 = vld [vmem:[#allocation7 + $0x24] ss:$8 sps:$4 sm:$0xff]   ;;  %v5423_v6 = vld [vmem:[#allocation7 + $0x20] ss:$8 sps:$4 sm:$0xff]   ;;  %v5424_v8 = vld [vmem:[#allocation7 + $0x34] ss:$8 sps:$4 sm:$0xff]  }
  0x4d   :  { %236 = vmatprep.subr.bf16.mxu0 %v5418_v3  ;;  %v5430_v7 = vld [vmem:[#allocation5] sm:$0xff]   ;;  %v5434_v9 = vld [vmem:[#allocation5 + $0x8] sm:$0xff]   ;;  %v5426_v10 = vld [vmem:[#allocation7 + $0x30] ss:$8 sps:$4 sm:$0xff]   ;;  %v7212_v43 = vmov 0.0   ;;  %vm5721_vm0 = vmmov 0  }
  0x4e   :  { %4845 = vmatprep.subr.bf16.mxu1 %v5430_v7  ;;  %v5427_v11 = vld [vmem:[#allocation7 + $0x44] ss:$8 sps:$4 sm:$0xff]   ;;  %v5429_v13 = vld [vmem:[#allocation7 + $0x40] ss:$8 sps:$4 sm:$0xff]   ;;  %v5442_v14 = vld [vmem:[#allocation5 + $0x18] sm:$0xff]   ;;  %vm844_vm1 = vcmask 130048  }
  0x4f   :  { %4846 = vmatpush3.bf16.msra.mxu1 %v5430_v7  ;;  %v5431_v15 = vld [vmem:[#allocation7 + $0x54] ss:$8 sps:$4 sm:$0xff]   ;;  %v5433_v16 = vld [vmem:[#allocation7 + $0x50] ss:$8 sps:$4 sm:$0xff]   ;;  %v5444_v17 = vld [vmem:[#allocation5 + $0x20] sm:$0xff]   ;;  %s5722_s3 = smov 112  }
  0x50   :  { %237 = vmatpush1.bf16.msra.mxu0 %v5420_v4  ;;  %4847 = vmatprep.subr.bf16.mxu1 %v5434_v9  ;;  %v5435_v18 = vld [vmem:[#allocation7 + $0x64] ss:$8 sps:$4 sm:$0xff]   ;;  %v74_v19 = vld [vmem:[#allocation2] sm:$0xf]  ;;  %v78_v20 = vld [vmem:[#allocation2 + $0x10] sm:$0xf] }
  0x51   :  { %238 = vmatprep.subr.bf16.mxu0 %v5421_v5  ;;  %v4511_v21 = vcombine.low %v74_v19, %v78_v20  ;;  %v5437_v22 = vld [vmem:[#allocation7 + $0x60] ss:$8 sps:$4 sm:$0xff]   ;;  %v5439_v24 = vld [vmem:[#allocation7 + $0x74] ss:$8 sps:$4 sm:$0xff]   ;;  %v5441_v25 = vld [vmem:[#allocation7 + $0x70] ss:$8 sps:$4 sm:$0xff]  }
  0x52   :  { %v5445_v23 = vld [vmem:[#allocation5 + $0x28] sm:$0xff]   ;;  %v75_v26 = vld [vmem:[#allocation2 + $0x4] sm:$0xf]  ;;  %v5447_v27 = vld [vmem:[#allocation5 + $0x30] sm:$0xff]   ;;  %s5723_s28 = smov 96   ;;  %s5724_s13 = smov 80  }
  0x53   :  { %4848 = vmatpush3.bf16.msra.mxu1 %v5434_v9  ;;  %4861 = vmatprep.mubr.bf16.mxu1 %v4511_v21  ;;  %v4487_v28 = vcombine.low %v74_v19, %v75_v26  ;;  %v5448_v29 = vld [vmem:[#allocation5 + $0x38] sm:$0xff]   ;;  %v82_v30 = vld [vmem:[#allocation2 + $0x20] sm:$0xf]  ;;  %v86_v31 = vld [vmem:[#allocation2 + $0x30] sm:$0xf]  ;;  %s5725_s14 = smov 48  }
  0x54   :  { %239 = vmatpush1.bf16.msra.mxu0 %v5423_v6  ;;  %4849 = vmatprep.subr.bf16.mxu1 %v5438_v12  ;;  %v4512_v32 = vcombine.low %v82_v30, %v86_v31  ;;  %v5446_v33 = vld [vmem:[#allocation2 + $0x8] sm:$0xff]   ;;  %v79_v34 = vld [vmem:[#allocation2 + $0x14] sm:$0xf]  ;;  %v5452_v36 = vld [vmem:[#allocation2 + $0x18] sm:$0xff]   ;;  %s5726_s15 = smov 32   ;;  %s5727_s16 = smov 16  }
  0x55   :  { %240 = vmatprep.subr.bf16.mxu0 %v5424_v8  ;;  %v4489_v35 = vcombine.low %v78_v20, %v79_v34  ;;  %v83_v37 = vld [vmem:[#allocation2 + $0x24] sm:$0xf]  ;;  %v5454_v39 = vld [vmem:[#allocation2 + $0x28] sm:$0xff]   ;;  %v87_v40 = vld [vmem:[#allocation2 + $0x34] sm:$0xf]  ;;  %vm2413_vm2 = vcmask 261120  }
  0x56   :  { %v4491_v38 = vcombine.low %v82_v30, %v83_v37  ;;  %v4493_v41 = vcombine.low %v86_v31, %v87_v40  ;;  %v5456_v42 = vld [vmem:[#allocation2 + $0x38] sm:$0xff]   ;;  %vm4324_vm3 = vcmask 392192   ;;  %vm4329_vm4 = vcmask 523264  }
  0x57   :  { %4850 = vmatpush3.bf16.msra.mxu1 %v5438_v12  ;;  %vm4334_vm5 = vcmask 654336   ;;  %vm4339_vm6 = vcmask 785408   ;;  %vm4344_vm7 = vcmask 916480  }
  0x58   :  { %241 = vmatpush1.bf16.msra.mxu0 %v5426_v10  ;;  %4851 = vmatprep.subr.bf16.mxu1 %v5442_v14 }
  0x59   :  { %242 = vmatprep.subr.bf16.mxu0 %v5427_v11 }
  0x5b   :  { %4852 = vmatpush3.bf16.msra.mxu1 %v5442_v14 }
  0x5c   :  { %243 = vmatpush1.bf16.msra.mxu0 %v5429_v13  ;;  %4853 = vmatprep.subr.bf16.mxu1 %v5444_v17 }
  0x5d   :  { %244 = vmatprep.subr.bf16.mxu0 %v5431_v15 }
  0x5f   :  { %4854 = vmatpush3.bf16.msra.mxu1 %v5444_v17 }
  0x60   :  { %245 = vmatpush1.bf16.msra.mxu0 %v5433_v16  ;;  %4855 = vmatprep.subr.bf16.mxu1 %v5445_v23 }
  0x61   :  { %246 = vmatprep.subr.bf16.mxu0 %v5435_v18 }
  0x63   :  { %4856 = vmatpush3.bf16.msra.mxu1 %v5445_v23 }
  0x64   :  { %247 = vmatpush1.bf16.msra.mxu0 %v5437_v22  ;;  %4857 = vmatprep.subr.bf16.mxu1 %v5447_v27 }
  0x65   :  { %248 = vmatprep.subr.bf16.mxu0 %v5439_v24 }
  0x67   :  { %4858 = vmatpush3.bf16.msra.mxu1 %v5447_v27 }
  0x68   :  { %249 = vmatpush1.bf16.msra.mxu0 %v5441_v25  ;;  %4859 = vmatprep.subr.bf16.mxu1 %v5448_v29 }
  0x69   :  { %4905 = vmatprep.subr.bf16.mxu0 %v7212_v43 }
  0x6b   :  { %267 = vmatmul.mubr.bf16.vlgmr.msra.gmra.mrb[0].mxu0 %v4487_v28  ;;  %4860 = vmatpush3.bf16.msra.mxu1 %v5448_v29 }
  0x6c   :  { %276 = vmatprep.mubr.bf16.mxu0 %v5719_v0  ;;  %4865 = vmatprep.subr.bf16.mxu1 %v7212_v43 }
  0x6e   :  { %4862 = vmatmul.mubr.bf16.vlgmr.msra.gmra.mrb[0].mxu1 %v4512_v32 }
  0x6f   :  { %4869 = vmatprep.mubr.msk.bf16.mxu1 %vm5721_vm0, %v7212_v43 }
  0x73   :  { %277 = vmatmul.mubr.bf16.gmra.mrb[4].mxu0 %v5446_v33 }
  0x74   :  { %286 = vmatprep.mubr.bf16.mxu0 %v5719_v0 }
  0x7b   :  { %287 = vmatmul.mubr.bf16.gmra.mrb[8].mxu0 %v4489_v35 }
  0x7c   :  { %296 = vmatprep.mubr.bf16.mxu0 %v5719_v0 }
  0x83   :  { %297 = vmatmul.mubr.bf16.gmra.mrb[12].mxu0 %v5452_v36 }
  0x84   :  { %306 = vmatprep.mubr.bf16.mxu0 %v5719_v0 }
  0x8b   :  { %307 = vmatmul.mubr.bf16.gmra.mrb[16].mxu0 %v4491_v38 }
  0x8c   :  { %316 = vmatprep.mubr.bf16.mxu0 %v5719_v0 }
  0x93   :  { %317 = vmatmul.mubr.bf16.gmra.mrb[20].mxu0 %v5454_v39 }
  0x94   :  { %326 = vmatprep.mubr.bf16.mxu0 %v5719_v0 }
  0x9b   :  { %327 = vmatmul.mubr.bf16.gmra.mrb[24].mxu0 %v4493_v41 }
  0x9c   :  { %336 = vmatprep.mubr.bf16.mxu0 %v5719_v0 }
  0xa3   :  { %337 = vmatmul.mubr.bf16.gmra.mrb[28].mxu0 %v5456_v42 }
  0xa4   :  { %4909 = vmatprep.mubr.msk.bf16.mxu0 %vm5721_vm0, %v7212_v43 }
 0x13e   :  { %v268_v44 = vpop.f32.mrb[0].mxu0 }
 0x13f   :  { %v270_v45 = vpop.f32.mrb[1].mxu0 }
 0x140   :  { %v272_v46 = vpop.f32.mrb[2].mxu0 }
 0x141   :  { %v5835_v47 = vpack.c.bf16 %v272_v46, %v268_v44  ;;  %v274_v48 = vpop.f32.mrb[3].mxu0  ;;  %v4863_v51 = vpop.f32.mrb[0].mxu1 }
 0x142   :  { %v5837_v49 = vpack.c.bf16 %v274_v48, %v270_v45  ;;  %v465_v53 = vpop.f32.mrb[1].mxu1  ;;  %v5905_v29 = vpack.c.bf16 %v4863_v51, %v4863_v51 }
 0x143   :  { %556 = vrot.lane.b32.xlu0 %v5835_v47, %s5722_s3  ;;  %v849_v50 = vsel %vm844_vm1, %v5835_v47, 0  ;;  %v5844_v55 = vpop.f32.mrb[2].mxu1  ;;  %v5855_v0 = vpack.c.bf16 %v465_v53, %v465_v53 }
 0x144   :  { %4866 = vmatpush3.bf16.xpose.msra.mxu1 %v849_v50  ;;  %v468_v57 = vpop.f32.mrb[3].mxu1  ;;  %v5945_v44 = vpack.c.bf16 %v5844_v55, %v5844_v55 }
 0x145   :  { %4867 = vmatprep.subr.bf16.mxu1 %v7212_v43  ;;  %v5879_v15 = vpack.c.bf16 %v468_v57, %v468_v57 }
 0x146   :  { %v278_v52 = vpop.f32.mrb[4].mxu0 }
 0x147   :  { %v280_v54 = vpop.f32.mrb[5].mxu0 }
 0x148   :  { %v282_v56 = vpop.f32.mrb[6].mxu0 }
 0x149   :  { %v5846_v58 = vpack.c.bf16 %v282_v56, %v278_v52  ;;  %v284_v59 = vpop.f32.mrb[7].mxu0 }
 0x14a   :  { %v5848_v60 = vpack.c.bf16 %v284_v59, %v280_v54 }
 0x14b   :  { %558 = vrot.lane.b32.xlu1 %v5846_v58, %s5722_s3  ;;  %v852_v61 = vsel %vm844_vm1, %v5846_v58, 0 }
 0x14c   :  { %4868 = vmatpush3.bf16.xpose.msra.mxu1 %v852_v61 }
 0x14d   :  { %4873 = vmatprep.subr.bf16.mxu1 %v7212_v43 }
 0x14e   :  { %v288_v62 = vpop.f32.mrb[8].mxu0 }
 0x14f   :  { %v290_v63 = vpop.f32.mrb[9].mxu0 }
 0x150   :  { %v292_v1 = vpop.f32.mrb[10].mxu0 }
 0x151   :  { %v5857_v2 = vpack.c.bf16 %v292_v1, %v288_v62  ;;  %v294_v3 = vpop.f32.mrb[11].mxu0 }
 0x152   :  { %v5859_v4 = vpack.c.bf16 %v294_v3, %v290_v63 }
 0x153   :  { %560 = vrot.lane.b32.xlu0 %v5857_v2, %s5722_s3  ;;  %4870 = vmatmul.mubr.msk.bf16.vlgmr.msra.gmra.mrb[4].mxu1 %vm844_vm1, %v5855_v0  ;;  %v898_v5 = vsel %vm844_vm1, %v5857_v2, 0 }
 0x154   :  { %4874 = vmatpush3.bf16.xpose.msra.mxu1 %v898_v5  ;;  %4877 = vmatprep.mubr.msk.bf16.mxu1 %vm5721_vm0, %v7212_v43 }
 0x155   :  { %4875 = vmatprep.subr.bf16.mxu1 %v7212_v43 }
 0x156   :  { %v298_v6 = vpop.f32.mrb[12].mxu0 }
 0x157   :  { %v300_v7 = vpop.f32.mrb[13].mxu0 }
 0x158   :  { %v302_v8 = vpop.f32.mrb[14].mxu0 }
 0x159   :  { %v5870_v9 = vpack.c.bf16 %v302_v8, %v298_v6  ;;  %v304_v10 = vpop.f32.mrb[15].mxu0 }
 0x15a   :  { %v5872_v11 = vpack.c.bf16 %v304_v10, %v300_v7 }
 0x15b   :  { %v901_v12 = vsel %vm844_vm1, %v5870_v9, 0  ;;  %562 = vrot.lane.b32.xlu1 %v5870_v9, %s5722_s3 }
 0x15c   :  { %4876 = vmatpush3.bf16.xpose.msra.mxu1 %v901_v12 }
 0x15d   :  { %4881 = vmatprep.subr.bf16.mxu1 %v7212_v43 }
 0x15e   :  { %v308_v13 = vpop.f32.mrb[16].mxu0 }
 0x15f   :  { %v310_v14 = vpop.f32.mrb[17].mxu0 }
 0x160   :  { %v312_v16 = vpop.f32.mrb[18].mxu0 }
 0x161   :  { %v5881_v17 = vpack.c.bf16 %v312_v16, %v308_v13  ;;  %v314_v18 = vpop.f32.mrb[19].mxu0 }
 0x162   :  { %v5883_v19 = vpack.c.bf16 %v314_v18, %v310_v14 }
 0x163   :  { %564 = vrot.lane.b32.xlu0 %v5881_v17, %s5722_s3  ;;  %4878 = vmatmul.mubr.msk.bf16.vlgmr.msra.gmra.mrb[8].mxu1 %vm844_vm1, %v5879_v15  ;;  %v947_v20 = vsel %vm844_vm1, %v5881_v17, 0 }
 0x164   :  { %4882 = vmatpush3.bf16.xpose.msra.mxu1 %v947_v20  ;;  %4885 = vmatprep.mubr.msk.bf16.mxu1 %vm5721_vm0, %v7212_v43 }
 0x165   :  { %4883 = vmatprep.subr.bf16.mxu1 %v7212_v43 }
 0x166   :  { %v318_v21 = vpop.f32.mrb[20].mxu0 }
 0x167   :  { %492 = vrot.lane.b32.xlu0 %v5855_v0, %s5722_s3  ;;  %v320_v22 = vpop.f32.mrb[21].mxu0 }
 0x168   :  { %v322_v23 = vpop.f32.mrb[22].mxu0 }
 0x169   :  { %v5896_v24 = vpack.c.bf16 %v322_v23, %v318_v21  ;;  %v324_v25 = vpop.f32.mrb[23].mxu0 }
 0x16a   :  { %v5898_v26 = vpack.c.bf16 %v324_v25, %v320_v22 }
 0x16b   :  { %566 = vrot.lane.b32.xlu0 %v5896_v24, %s5722_s3  ;;  %v950_v27 = vsel %vm844_vm1, %v5896_v24, 0 }
 0x16c   :  { %4884 = vmatpush3.bf16.xpose.msra.mxu1 %v950_v27 }
 0x16d   :  { %4889 = vmatprep.subr.bf16.mxu1 %v7212_v43 }
 0x16e   :  { %v328_v28 = vpop.f32.mrb[24].mxu0 }
 0x16f   :  { %572 = vrot.lane.b32.xlu0 %v5835_v47, %s5723_s28  ;;  %v330_v30 = vpop.f32.mrb[25].mxu0 }
 0x170   :  { %v332_v31 = vpop.f32.mrb[26].mxu0 }
 0x171   :  { %v5909_v32 = vpack.c.bf16 %v332_v31, %v328_v28  ;;  %v334_v33 = vpop.f32.mrb[27].mxu0 }
 0x172   :  { %v5911_v34 = vpack.c.bf16 %v334_v33, %v330_v30 }
 0x173   :  { %496 = vrot.lane.b32.xlu0 %v5905_v29, %s5722_s3  ;;  %568 = vrot.lane.b32.xlu1 %v5909_v32, %s5722_s3  ;;  %v996_v35 = vsel %vm844_vm1, %v5909_v32, 0 }
 0x174   :  { %4886 = vmatmul.mubr.msk.bf16.vlgmr.msra.gmra.mrb[12].mxu1 %vm844_vm1, %v5905_v29 }
 0x175   :  { %4890 = vmatpush3.bf16.xpose.msra.mxu1 %v996_v35  ;;  %4893 = vmatprep.mubr.msk.bf16.mxu1 %vm5721_vm0, %v7212_v43 }
 0x176   :  { %v338_v36 = vpop.f32.mrb[28].mxu0  ;;  %4891 = vmatprep.subr.bf16.mxu1 %v7212_v43 }
 0x177   :  { %574 = vrot.lane.b32.xlu0 %v5846_v58, %s5723_s28  ;;  %494 = vrot.lane.b32.xlu1 %v5879_v15, %s5722_s3  ;;  %v340_v37 = vpop.f32.mrb[29].mxu0 }
 0x178   :  { %v342_v38 = vpop.f32.mrb[30].mxu0 }
 0x179   :  { %v5928_v39 = vpack.c.bf16 %v342_v38, %v338_v36  ;;  %v344_v40 = vpop.f32.mrb[31].mxu0 }
 0x17a   :  { %v5930_v41 = vpack.c.bf16 %v344_v40, %v340_v37 }
 0x17b   :  { %580 = vrot.lane.b32.xlu0 %v5881_v17, %s5723_s28  ;;  %570 = vrot.lane.b32.xlu1 %v5928_v39, %s5722_s3  ;;  %v999_v42 = vsel %vm844_vm1, %v5928_v39, 0 }
 0x17d   :  { %4892 = vmatpush3.bf16.xpose.msra.mxu1 %v999_v42 }
 0x17e   :  { %4897 = vmatprep.subr.bf16.mxu1 %v7212_v43 }
 0x17f   :  { %500 = vrot.lane.b32.xlu0 %v5855_v0, %s5723_s28  ;;  %576 = vrot.lane.b32.xlu1 %v5857_v2, %s5723_s28 }
 0x183   :  { %582 = vrot.lane.b32.xlu0 %v5896_v24, %s5723_s28  ;;  %498 = vrot.lane.b32.xlu1 %v5945_v44, %s5722_s3 }
 0x184   :  { %4894 = vmatmul.mubr.msk.bf16.vlgmr.msra.gmra.mrb[16].mxu1 %vm844_vm1, %v5945_v44 }
 0x185   :  { %4901 = vmatprep.mubr.msk.bf16.mxu1 %vm5721_vm0, %v7212_v43 }
 0x187   :  { %588 = vrot.lane.b32.xlu0 %v5835_v47, %s5724_s13  ;;  %578 = vrot.lane.b32.xlu1 %v5870_v9, %s5723_s28 }
 0x18b   :  { %504 = vrot.lane.b32.xlu0 %v5905_v29, %s5723_s28  ;;  %584 = vrot.lane.b32.xlu1 %v5909_v32, %s5723_s28 }
 0x18f   :  { %590 = vrot.lane.b32.xlu0 %v5846_v58, %s5724_s13  ;;  %502 = vrot.lane.b32.xlu1 %v5879_v15, %s5723_s28 }
 0x193   :  { %596 = vrot.lane.b32.xlu0 %v5881_v17, %s5724_s13  ;;  %586 = vrot.lane.b32.xlu1 %v5928_v39, %s5723_s28 }
 0x197   :  { %508 = vrot.lane.b32.xlu0 %v5855_v0, %s5724_s13  ;;  %592 = vrot.lane.b32.xlu1 %v5857_v2, %s5724_s13 }
 0x19b   :  { %598 = vrot.lane.b32.xlu0 %v5896_v24, %s5724_s13  ;;  %506 = vrot.lane.b32.xlu1 %v5945_v44, %s5723_s28 }
 0x19f   :  { %604 = vrot.lane.b32.xlu0 %v5835_v47, %s5713_s27  ;;  %594 = vrot.lane.b32.xlu1 %v5870_v9, %s5724_s13 }
 0x1a3   :  { %512 = vrot.lane.b32.xlu0 %v5905_v29, %s5724_s13  ;;  %600 = vrot.lane.b32.xlu1 %v5909_v32, %s5724_s13 }
 0x1a7   :  { %606 = vrot.lane.b32.xlu0 %v5846_v58, %s5713_s27  ;;  %510 = vrot.lane.b32.xlu1 %v5879_v15, %s5724_s13 }
 0x1ab   :  { %612 = vrot.lane.b32.xlu0 %v5881_v17, %s5713_s27  ;;  %602 = vrot.lane.b32.xlu1 %v5928_v39, %s5724_s13 }
 0x1af   :  { %516 = vrot.lane.b32.xlu0 %v5855_v0, %s5713_s27  ;;  %608 = vrot.lane.b32.xlu1 %v5857_v2, %s5713_s27 }
 0x1b3   :  { %614 = vrot.lane.b32.xlu0 %v5896_v24, %s5713_s27  ;;  %514 = vrot.lane.b32.xlu1 %v5945_v44, %s5724_s13 }
 0x1b5   :  { %v557_v45 = vpop.permute.xlu0 %556 }
 0x1b6   :  { %v1045_v46 = vsel %vm844_vm1, %v557_v45, 0 }
 0x1b7   :  { %620 = vrot.lane.b32.xlu0 %v5835_v47, %s5725_s14  ;;  %610 = vrot.lane.b32.xlu1 %v5870_v9, %s5713_s27 }
 0x1b8   :  { %4898 = vmatpush3.bf16.xpose.msra.mxu1 %v1045_v46 }
 0x1b9   :  { %4899 = vmatprep.subr.bf16.mxu1 %v7212_v43 }
 0x1bb   :  { %520 = vrot.lane.b32.xlu0 %v5905_v29, %s5713_s27  ;;  %616 = vrot.lane.b32.xlu1 %v5909_v32, %s5713_s27 }
 0x1bd   :  { %v559_v48 = vpop.permute.xlu1 %558 }
 0x1be   :  { %v1048_v50 = vsel %vm844_vm1, %v559_v48, 0 }
 0x1bf   :  { %622 = vrot.lane.b32.xlu0 %v5846_v58, %s5725_s14  ;;  %518 = vrot.lane.b32.xlu1 %v5879_v15, %s5713_s27 }
 0x1c0   :  { %4900 = vmatpush3.bf16.xpose.msra.mxu1 %v1048_v50 }
 0x1c1   :  { %4913 = vmatprep.subr.bf16.mxu1 %v7212_v43 }
 0x1c3   :  { %628 = vrot.lane.b32.xlu0 %v5881_v17, %s5725_s14  ;;  %618 = vrot.lane.b32.xlu1 %v5928_v39, %s5713_s27 }
 0x1c5   :  { %v561_v51 = vpop.permute.xlu0 %560 }
 0x1c6   :  { %v1094_v52 = vsel %vm844_vm1, %v561_v51, 0 }
 0x1c7   :  { %4906 = vmatpush3.bf16.xpose.msra.mxu0 %v1094_v52  ;;  %524 = vrot.lane.b32.xlu0 %v5855_v0, %s5725_s14 }
 0x1c8   :  { %624 = vrot.lane.b32.xlu1 %v5857_v2, %s5725_s14  ;;  %4907 = vmatprep.subr.bf16.mxu0 %v7212_v43 }
 0x1cb   :  { %630 = vrot.lane.b32.xlu0 %v5896_v24, %s5725_s14 }
 0x1cc   :  { %522 = vrot.lane.b32.xlu1 %v5945_v44, %s5713_s27 }
 0x1cd   :  { %v563_v53 = vpop.permute.xlu1 %562 }
 0x1ce   :  { %v1097_v54 = vsel %vm844_vm1, %v563_v53, 0 }
 0x1cf   :  { %636 = vrot.lane.b32.xlu0 %v5835_v47, %s5726_s15  ;;  %4908 = vmatpush3.bf16.xpose.msra.mxu0 %v1097_v54 }
 0x1d0   :  { %626 = vrot.lane.b32.xlu1 %v5870_v9, %s5725_s14  ;;  %4921 = vmatprep.subr.bf16.mxu0 %v7212_v43 }
 0x1d3   :  { %528 = vrot.lane.b32.xlu0 %v5905_v29, %s5725_s14 }
 0x1d4   :  { %632 = vrot.lane.b32.xlu1 %v5909_v32, %s5725_s14 }
 0x1d5   :  { %v565_v55 = vpop.permute.xlu0 %564 }
 0x1d6   :  { %v1143_v57 = vsel %vm844_vm1, %v565_v55, 0 }
 0x1d7   :  { %638 = vrot.lane.b32.xlu0 %v5846_v58, %s5726_s15 }
 0x1d8   :  { %526 = vrot.lane.b32.xlu1 %v5879_v15, %s5725_s14 }
 0x1d9   :  { %v493_v56 = vpop.permute.xlu0 %492 }
 0x1da   :  { %4902 = vmatmul.mubr.msk.bf16.vlgmr.msra.gmra.mrb[20].mxu1 %vm844_vm1, %v493_v56 }
 0x1db   :  { %4914 = vmatpush3.bf16.xpose.msra.mxu1 %v1143_v57  ;;  %644 = vrot.lane.b32.xlu0 %v5881_v17, %s5726_s15 }
 0x1dc   :  { %634 = vrot.lane.b32.xlu1 %v5928_v39, %s5725_s14  ;;  %4915 = vmatprep.subr.bf16.mxu1 %v7212_v43 }
 0x1dd   :  { %v567_v59 = vpop.permute.xlu0 %566  ;;  %4917 = vmatprep.mubr.msk.bf16.mxu1 %vm5721_vm0, %v7212_v43 }
 0x1de   :  { %v1146_v62 = vsel %vm844_vm1, %v567_v59, 0 }
 0x1df   :  { %532 = vrot.lane.b32.xlu0 %v5855_v0, %s5726_s15 }
 0x1e0   :  { %640 = vrot.lane.b32.xlu1 %v5857_v2, %s5726_s15 }
 0x1e1   :  { %v573_v61 = vpop.permute.xlu0 %572 }
 0x1e2   :  { %v1241_v6 = vsel %vm844_vm1, %v573_v61, 0 }
 0x1e3   :  { %4916 = vmatpush3.bf16.xpose.msra.mxu1 %v1146_v62  ;;  %646 = vrot.lane.b32.xlu0 %v5896_v24, %s5726_s15 }
 0x1e4   :  { %530 = vrot.lane.b32.xlu1 %v5945_v44, %s5725_s14  ;;  %4929 = vmatprep.subr.bf16.mxu1 %v7212_v43 }
 0x1e5   :  { %v497_v63 = vpop.permute.xlu0 %496  ;;  %v569_v1 = vpop.permute.xlu1 %568 }
 0x1e6   :  { %v1192_v7 = vsel %vm844_vm1, %v569_v1, 0 }
 0x1e7   :  { %652 = vrot.lane.b32.xlu0 %v5835_v47, %s5727_s16 }
 0x1e8   :  { %642 = vrot.lane.b32.xlu1 %v5870_v9, %s5726_s15 }
 0x1e9   :  { %v575_v3 = vpop.permute.xlu0 %574  ;;  %v495_v5 = vpop.permute.xlu1 %494 }
 0x1ea   :  { %4918 = vmatmul.mubr.msk.bf16.vlgmr.msra.gmra.mrb[24].mxu1 %vm844_vm1, %v497_v63  ;;  %4910 = vmatmul.mubr.msk.bf16.vlgmr.msra.gmra.mrb[32].mxu0 %vm844_vm1, %v495_v5  ;;  %v1244_v13 = vsel %vm844_vm1, %v575_v3, 0 }
 0x1eb   :  { %4922 = vmatpush3.bf16.xpose.msra.mxu0 %v1192_v7  ;;  %4930 = vmatpush3.bf16.xpose.msra.mxu1 %v1241_v6 }
 0x1ec   :  { %536 = vrot.lane.b32.xlu0 %v5905_v29, %s5726_s15  ;;  %648 = vrot.lane.b32.xlu1 %v5909_v32, %s5726_s15 }
 0x1ed   :  { %v581_v47 = vpop.permute.xlu0 %580  ;;  %v571_v8 = vpop.permute.xlu1 %570  ;;  %4923 = vmatprep.subr.bf16.mxu0 %v7212_v43  ;;  %4931 = vmatprep.subr.bf16.mxu1 %v7212_v43 }
 0x1ee   :  { %4925 = vmatprep.mubr.msk.bf16.mxu0 %vm5721_vm0, %v7212_v43  ;;  %4933 = vmatprep.mubr.msk.bf16.mxu1 %vm5721_vm0, %v7212_v43  ;;  %v1195_v14 = vsel %vm844_vm1, %v571_v8, 0  ;;  %v1339_v21 = vsel %vm844_vm1, %v581_v47, 0 }
 0x1f0   :  { %654 = vrot.lane.b32.xlu0 %v5846_v58, %s5727_s16  ;;  %534 = vrot.lane.b32.xlu1 %v5879_v15, %s5726_s15 }
 0x1f1   :  { %v501_v10 = vpop.permute.xlu0 %500  ;;  %v577_v12 = vpop.permute.xlu1 %576 }
 0x1f3   :  { %4924 = vmatpush3.bf16.xpose.msra.mxu0 %v1195_v14  ;;  %4932 = vmatpush3.bf16.xpose.msra.mxu1 %v1244_v13 }
 0x1f4   :  { %660 = vrot.lane.b32.xlu0 %v5881_v17, %s5727_s16  ;;  %650 = vrot.lane.b32.xlu1 %v5928_v39, %s5726_s15  ;;  %v1290_v17 = vsel %vm844_vm1, %v577_v12, 0 }
 0x1f5   :  { %v583_v16 = vpop.permute.xlu0 %582  ;;  %v499_v18 = vpop.permute.xlu1 %498  ;;  %4937 = vmatprep.subr.bf16.mxu0 %v7212_v43  ;;  %4945 = vmatprep.subr.bf16.mxu1 %v7212_v43 }
 0x1f8   :  { %540 = vrot.lane.b32.xlu0 %v5855_v0, %s5727_s16  ;;  %656 = vrot.lane.b32.xlu1 %v5857_v2, %s5727_s16 }
 0x1f9   :  { %v589_v58 = vpop.permute.xlu0 %588  ;;  %v579_v20 = vpop.permute.xlu1 %578 }
 0x1fa   :  { %4926 = vmatmul.mubr.msk.bf16.vlgmr.msra.gmra.mrb[36].mxu0 %vm844_vm1, %v499_v18  ;;  %4934 = vmatmul.mubr.msk.bf16.vlgmr.msra.gmra.mrb[28].mxu1 %vm844_vm1, %v501_v10  ;;  %v1293_v25 = vsel %vm844_vm1, %v579_v20, 0  ;;  %v1437_v30 = vsel %vm844_vm1, %v589_v58, 0 }
 0x1fb   :  { %4938 = vmatpush3.bf16.xpose.msra.mxu0 %v1290_v17  ;;  %4946 = vmatpush3.bf16.xpose.msra.mxu1 %v1339_v21 }
 0x1fc   :  { %662 = vrot.lane.b32.xlu0 %v5896_v24, %s5727_s16  ;;  %538 = vrot.lane.b32.xlu1 %v5945_v44, %s5726_s15  ;;  %v1342_v24 = vsel %vm844_vm1, %v583_v16, 0 }
 0x1fd   :  { %v505_v0 = vpop.permute.xlu0 %504  ;;  %v585_v2 = vpop.permute.xlu1 %584  ;;  %4939 = vmatprep.subr.bf16.mxu0 %v7212_v43  ;;  %4947 = vmatprep.subr.bf16.mxu1 %v7212_v43 }
 0x1fe   :  { %4941 = vmatprep.mubr.msk.bf16.mxu0 %vm5721_vm0, %v7212_v43  ;;  %4949 = vmatprep.mubr.msk.bf16.mxu1 %vm5721_vm0, %v7212_v43  ;;  %v1388_v31 = vsel %vm844_vm1, %v585_v2, 0 }
 0x200   :  { %544 = vrot.lane.b32.xlu0 %v5905_v29, %s5727_s16  ;;  %658 = vrot.lane.b32.xlu1 %v5870_v9, %s5727_s16 }
 0x201   :  { %v591_v22 = vpop.permute.xlu0 %590  ;;  %v503_v23 = vpop.permute.xlu1 %502 }
 0x202   :  { %v1440_v36 = vsel %vm844_vm1, %v591_v22, 0 }
 0x203   :  { %4940 = vmatpush3.bf16.xpose.msra.mxu0 %v1293_v25  ;;  %4948 = vmatpush3.bf16.xpose.msra.mxu1 %v1342_v24 }
 0x204   :  { %680 = vrot.lane.b32.xlu0 %v5859_v4, %s5722_s3  ;;  %664 = vrot.lane.b32.xlu1 %v5909_v32, %s5727_s16 }
 0x205   :  { %v597_v27 = vpop.permute.xlu0 %596  ;;  %v587_v28 = vpop.permute.xlu1 %586  ;;  %4953 = vmatprep.subr.bf16.mxu0 %v7212_v43  ;;  %4961 = vmatprep.subr.bf16.mxu1 %v7212_v43 }
 0x206   :  { %v1391_v37 = vsel %vm844_vm1, %v587_v28, 0 }
 0x208   :  { %682 = vrot.lane.b32.xlu0 %v5872_v11, %s5722_s3  ;;  %542 = vrot.lane.b32.xlu1 %v5879_v15, %s5727_s16 }
 0x209   :  { %v509_v9 = vpop.permute.xlu0 %508  ;;  %v593_v29 = vpop.permute.xlu1 %592 }
 0x20a   :  { %4942 = vmatmul.mubr.msk.bf16.vlgmr.msra.gmra.mrb[40].mxu0 %vm844_vm1, %v503_v23  ;;  %4950 = vmatmul.mubr.msk.bf16.vlgmr.msra.gmra.mrb[32].mxu1 %vm844_vm1, %v505_v0  ;;  %v1486_v45 = vsel %vm844_vm1, %v593_v29, 0 }
 0x20b   :  { %4954 = vmatpush3.bf16.xpose.msra.mxu0 %v1388_v31  ;;  %4962 = vmatpush3.bf16.xpose.msra.mxu1 %v1437_v30 }
 0x20c   :  { %686 = vrot.lane.b32.xlu0 %v5898_v26, %s5722_s3  ;;  %666 = vrot.lane.b32.xlu1 %v5928_v39, %s5727_s16 }
 0x20d   :  { %v599_v32 = vpop.permute.xlu0 %598  ;;  %v507_v15 = vpop.permute.xlu1 %506  ;;  %4955 = vmatprep.subr.bf16.mxu0 %v7212_v43  ;;  %4963 = vmatprep.subr.bf16.mxu1 %v7212_v43 }
 0x20e   :  { %4957 = vmatprep.mubr.msk.bf16.mxu0 %vm5721_vm0, %v7212_v43  ;;  %4965 = vmatprep.mubr.msk.bf16.mxu1 %vm5721_vm0, %v7212_v43  ;;  %v1538_v52 = vsel %vm844_vm1, %v599_v32, 0 }
 0x210   :  { %700 = vrot.lane.b32.xlu0 %v5837_v49, %s5723_s28  ;;  %546 = vrot.lane.b32.xlu1 %v5945_v44, %s5727_s16  ;;  %v1535_v44 = vsel %vm844_vm1, %v597_v27, 0 }
 0x211   :  { %v605_v33 = vpop.permute.xlu0 %604  ;;  %v595_v35 = vpop.permute.xlu1 %594 }
 0x212   :  { %v1489_v53 = vsel %vm844_vm1, %v595_v35, 0  ;;  %v1633_v63 = vsel %vm844_vm1, %v605_v33, 0 }
 0x213   :  { %4956 = vmatpush3.bf16.xpose.msra.mxu0 %v1391_v37  ;;  %4964 = vmatpush3.bf16.xpose.msra.mxu1 %v1440_v36 }
 0x214   :  { %702 = vrot.lane.b32.xlu0 %v5848_v60, %s5723_s28  ;;  %676 = vrot.lane.b32.xlu1 %v5837_v49, %s5722_s3 }
 0x215   :  { %v513_v38 = vpop.permute.xlu0 %512  ;;  %v601_v39 = vpop.permute.xlu1 %600  ;;  %4969 = vmatprep.subr.bf16.mxu0 %v7212_v43  ;;  %4977 = vmatprep.subr.bf16.mxu1 %v7212_v43 }
 0x216   :  { %v1584_v1 = vsel %vm844_vm1, %v601_v39, 0 }
 0x218   :  { %708 = vrot.lane.b32.xlu0 %v5883_v19, %s5723_s28  ;;  %678 = vrot.lane.b32.xlu1 %v5848_v60, %s5722_s3 }
 0x219   :  { %v607_v40 = vpop.permute.xlu0 %606  ;;  %v511_v42 = vpop.permute.xlu1 %510 }
 0x21a   :  { %4958 = vmatmul.mubr.msk.bf16.vlgmr.msra.gmra.mrb[44].mxu0 %vm844_vm1, %v507_v15  ;;  %4966 = vmatmul.mubr.msk.bf16.vlgmr.msra.gmra.mrb[36].mxu1 %vm844_vm1, %v509_v9  ;;  %v1636_v8 = vsel %vm844_vm1, %v607_v40, 0 }
 0x21b   :  { %4970 = vmatpush3.bf16.xpose.msra.mxu0 %v1486_v45  ;;  %4978 = vmatpush3.bf16.xpose.msra.mxu1 %v1535_v44 }
 0x21c   :  { %710 = vrot.lane.b32.xlu0 %v5898_v26, %s5723_s28  ;;  %684 = vrot.lane.b32.xlu1 %v5883_v19, %s5722_s3 }
 0x21d   :  { %v6168_v46 = vpop.permute.xlu0 %612  ;;  %v603_v48 = vpop.permute.xlu1 %602  ;;  %4971 = vmatprep.subr.bf16.mxu0 %v7212_v43  ;;  %4979 = vmatprep.subr.bf16.mxu1 %v7212_v43 }
 0x21e   :  { %4973 = vmatprep.mubr.msk.bf16.mxu0 %vm5721_vm0, %v7212_v43  ;;  %4981 = vmatprep.mubr.msk.bf16.mxu1 %vm5721_vm0, %v7212_v43  ;;  %v1587_v10 = vsel %vm844_vm1, %v603_v48, 0  ;;  %v1731_v21 = vsel %vm844_vm1, %v6168_v46, 0 }
 0x220   :  { %724 = vrot.lane.b32.xlu0 %v5837_v49, %s5724_s13  ;;  %688 = vrot.lane.b32.xlu1 %v5911_v34, %s5722_s3 }
 0x221   :  { %v517_v50 = vpop.permute.xlu0 %516  ;;  %v609_v51 = vpop.permute.xlu1 %608 }
 0x222   :  { %v1682_v17 = vsel %vm844_vm1, %v609_v51, 0 }
 0x223   :  { %4972 = vmatpush3.bf16.xpose.msra.mxu0 %v1489_v53  ;;  %4980 = vmatpush3.bf16.xpose.msra.mxu1 %v1538_v52 }
 0x224   :  { %726 = vrot.lane.b32.xlu0 %v5848_v60, %s5724_s13  ;;  %704 = vrot.lane.b32.xlu1 %v5859_v4, %s5723_s28 }
 0x225   :  { %v6186_v54 = vpop.permute.xlu0 %614  ;;  %v515_v55 = vpop.permute.xlu1 %514  ;;  %4985 = vmatprep.subr.bf16.mxu0 %v7212_v43  ;;  %4993 = vmatprep.subr.bf16.mxu1 %v7212_v43 }
 0x226   :  { %v6190_v56 = vpop.f32.mrb[4].mxu1  ;;  %v1734_v24 = vsel %vm844_vm1, %v6186_v54, 0 }
 0x227   :  { %v4871_v57 = vpop.f32.mrb[5].mxu1 }
 0x228   :  { %732 = vrot.lane.b32.xlu0 %v5883_v19, %s5724_s13  ;;  %706 = vrot.lane.b32.xlu1 %v5872_v11, %s5723_s28  ;;  %v891_v59 = vpop.f32.mrb[6].mxu1 }
 0x229   :  { %v6196_v61 = vpop.permute.xlu0 %620  ;;  %v611_v62 = vpop.permute.xlu1 %610 }
 0x22a   :  { %4974 = vmatmul.mubr.msk.bf16.vlgmr.msra.gmra.mrb[48].mxu0 %vm844_vm1, %v511_v42  ;;  %4982 = vmatmul.mubr.msk.bf16.vlgmr.msra.gmra.mrb[40].mxu1 %vm844_vm1, %v513_v38  ;;  %v4872_v3 = vpop.f32.mrb[7].mxu1  ;;  %v1685_v25 = vsel %vm844_vm1, %v611_v62, 0  ;;  %v1829_v15 = vsel %vm844_vm1, %v6196_v61, 0 }
 0x22b   :  { %4986 = vmatpush3.bf16.xpose.msra.mxu0 %v1584_v1  ;;  %4994 = vmatpush3.bf16.xpose.msra.mxu1 %v1633_v63 }
 0x22c   :  { %734 = vrot.lane.b32.xlu0 %v5898_v26, %s5724_s13  ;;  %712 = vrot.lane.b32.xlu1 %v5911_v34, %s5723_s28 }
 0x22d   :  { %v6206_v5 = vpop.permute.xlu0 %520  ;;  %v617_v6 = vpop.permute.xlu1 %616  ;;  %4987 = vmatprep.subr.bf16.mxu0 %v7212_v43  ;;  %4995 = vmatprep.subr.bf16.mxu1 %v7212_v43 }
 0x22e   :  { %4989 = vmatprep.mubr.msk.bf16.mxu0 %vm5721_vm0, %v7212_v43  ;;  %4997 = vmatprep.mubr.msk.bf16.mxu1 %vm5721_vm0, %v7212_v43  ;;  %v1780_v33 = vsel %vm844_vm1, %v617_v6, 0 }
 0x230   :  { %748 = vrot.lane.b32.xlu0 %v5837_v49, %s5713_s27  ;;  %728 = vrot.lane.b32.xlu1 %v5859_v4, %s5724_s13 }
 0x231   :  { %v6218_v7 = vpop.permute.xlu0 %622  ;;  %v519_v47 = vpop.permute.xlu1 %518 }
 0x232   :  { %v1832_v40 = vsel %vm844_vm1, %v6218_v7, 0 }
 0x233   :  { %4988 = vmatpush3.bf16.xpose.msra.mxu0 %v1587_v10  ;;  %4996 = vmatpush3.bf16.xpose.msra.mxu1 %v1636_v8  ;;  %v2414_v10 = vsel %vm2413_vm2, %v6190_v56, -inf }
 0x234   :  { %750 = vrot.lane.b32.xlu0 %v5848_v60, %s5713_s27  ;;  %730 = vrot.lane.b32.xlu1 %v5872_v11, %s5724_s13 }
 0x235   :  { %v6226_v12 = vpop.permute.xlu0 %628  ;;  %v6228_v13 = vpop.permute.xlu1 %618  ;;  %5001 = vmatprep.subr.bf16.mxu0 %v7212_v43  ;;  %5009 = vmatprep.subr.bf16.mxu1 %v7212_v43 }
 0x236   :  { %v6232_v14 = vpop.f32.mrb[8].mxu1  ;;  %v1783_v42 = vsel %vm844_vm1, %v6228_v13, 0  ;;  %v1927_v53 = vsel %vm844_vm1, %v6226_v12, 0 }
 0x237   :  { %v4879_v16 = vpop.f32.mrb[9].mxu1 }
 0x238   :  { %756 = vrot.lane.b32.xlu0 %v5883_v19, %s5713_s27  ;;  %736 = vrot.lane.b32.xlu1 %v5911_v34, %s5724_s13  ;;  %v940_v18 = vpop.f32.mrb[10].mxu1 }
 0x239   :  { %v6238_v58 = vpop.permute.xlu0 %524  ;;  %v4880_v20 = vpop.f32.mrb[11].mxu1 }
 0x23a   :  { %4990 = vmatmul.mubr.msk.bf16.vlgmr.msra.gmra.mrb[52].mxu0 %vm844_vm1, %v515_v55  ;;  %v6244_v0 = vpop.permute.xlu1 %624  ;;  %4998 = vmatmul.mubr.msk.bf16.vlgmr.msra.gmra.mrb[44].mxu1 %vm844_vm1, %v517_v50 }
 0x23b   :  { %5002 = vmatpush3.bf16.xpose.msra.mxu0 %v1682_v17  ;;  %5010 = vmatpush3.bf16.xpose.msra.mxu1 %v1731_v21  ;;  %v1878_v54 = vsel %vm844_vm1, %v6244_v0, 0 }
 0x23c   :  { %758 = vrot.lane.b32.xlu0 %v5898_v26, %s5713_s27  ;;  %752 = vrot.lane.b32.xlu1 %v5859_v4, %s5713_s27 }
 0x23d   :  { %v6251_v2 = vpop.permute.xlu0 %630  ;;  %5003 = vmatprep.subr.bf16.mxu0 %v7212_v43  ;;  %5011 = vmatprep.subr.bf16.mxu1 %v7212_v43 }
 0x23e   :  { %v523_v22 = vpop.permute.xlu1 %522  ;;  %5005 = vmatprep.mubr.msk.bf16.mxu0 %vm5721_vm0, %v7212_v43  ;;  %5013 = vmatprep.mubr.msk.bf16.mxu1 %vm5721_vm0, %v7212_v43  ;;  %v1930_v62 = vsel %vm844_vm1, %v6251_v2, 0 }
 0x240   :  { %772 = vrot.lane.b32.xlu0 %v5837_v49, %s5725_s14  ;;  %690 = vrot.lane.b32.xlu1 %v5930_v41, %s5722_s3 }
 0x241   :  { %v6263_v23 = vpop.permute.xlu0 %636 }
 0x242   :  { %v6268_v27 = vpop.permute.xlu1 %626  ;;  %v2025_v12 = vsel %vm844_vm1, %v6263_v23, 0 }
 0x243   :  { %5004 = vmatpush3.bf16.xpose.msra.mxu0 %v1685_v25  ;;  %5012 = vmatpush3.bf16.xpose.msra.mxu1 %v1734_v24  ;;  %v1881_v63 = vsel %vm844_vm1, %v6268_v27, 0 }
 0x244   :  { %774 = vrot.lane.b32.xlu0 %v5848_v60, %s5725_s14  ;;  %714 = vrot.lane.b32.xlu1 %v5930_v41, %s5723_s28 }
 0x245   :  { %v6274_v28 = vpop.permute.xlu0 %528  ;;  %5017 = vmatprep.subr.bf16.mxu0 %v7212_v43  ;;  %5025 = vmatprep.subr.bf16.mxu1 %v7212_v43 }
 0x246   :  { %v6278_v9 = vpop.permute.xlu1 %632 }
 0x247   :  { %v6280_v29 = vpop.f32.mrb[12].mxu1  ;;  %v1976_v7 = vsel %vm844_vm1, %v6278_v9, 0 }
 0x248   :  { %780 = vrot.lane.b32.xlu0 %v5883_v19, %s5725_s14  ;;  %738 = vrot.lane.b32.xlu1 %v5930_v41, %s5724_s13  ;;  %v4887_v30 = vpop.f32.mrb[13].mxu1  ;;  %v2420_v16 = vsel %vm2413_vm2, %v6280_v29, -inf }
 0x249   :  { %v6286_v31 = vpop.permute.xlu0 %638  ;;  %v989_v32 = vpop.f32.mrb[14].mxu1 }
 0x24a   :  { %5006 = vmatmul.mubr.msk.bf16.vlgmr.msra.gmra.mrb[56].mxu0 %vm844_vm1, %v519_v47  ;;  %v527_v35 = vpop.permute.xlu1 %526  ;;  %5014 = vmatmul.mubr.msk.bf16.vlgmr.msra.gmra.mrb[48].mxu1 %vm844_vm1, %v6206_v5  ;;  %v4888_v36 = vpop.f32.mrb[15].mxu1  ;;  %v2028_v17 = vsel %vm844_vm1, %v6286_v31, 0  ;;  %v2417_v32 = vsel %vm2413_vm2, %v6232_v14, -inf }
 0x24b   :  { %5018 = vmatpush3.bf16.xpose.msra.mxu0 %v1780_v33  ;;  %5026 = vmatpush3.bf16.xpose.msra.mxu1 %v1829_v15 }
 0x24c   :  { %782 = vrot.lane.b32.xlu0 %v5898_v26, %s5725_s14  ;;  %754 = vrot.lane.b32.xlu1 %v5872_v11, %s5713_s27 }
 0x24d   :  { %v6298_v37 = vpop.permute.xlu0 %644  ;;  %5019 = vmatprep.subr.bf16.mxu0 %v7212_v43  ;;  %5027 = vmatprep.subr.bf16.mxu1 %v7212_v43 }
 0x24e   :  { %v6302_v38 = vpop.permute.xlu1 %634  ;;  %5021 = vmatprep.mubr.msk.bf16.mxu0 %vm5721_vm0, %v7212_v43  ;;  %5029 = vmatprep.mubr.msk.bf16.mxu1 %vm5721_vm0, %v7212_v43  ;;  %v2123_v24 = vsel %vm844_vm1, %v6298_v37, 0 }
 0x250   :  { %760 = vrot.lane.b32.xlu1 %v5911_v34, %s5713_s27 }
 0x251   :  { %v6310_v39 = vpop.permute.xlu0 %532 }
 0x252   :  { %v6316_v44 = vpop.permute.xlu1 %640 }
 0x253   :  { %5020 = vmatpush3.bf16.xpose.msra.mxu0 %v1783_v42  ;;  %5028 = vmatpush3.bf16.xpose.msra.mxu1 %v1832_v40 }
 0x254   :  { %762 = vrot.lane.b32.xlu1 %v5930_v41, %s5713_s27  ;;  %5033 = vmatprep.subr.bf16.mxu0 %v7212_v43 }
 0x255   :  { %v6321_v45 = vpop.permute.xlu0 %646  ;;  %5041 = vmatprep.subr.bf16.mxu1 %v7212_v43 }
 0x256   :  { %v6324_v46 = vpop.permute.xlu1 %530  ;;  %v2126_v30 = vsel %vm844_vm1, %v6321_v45, 0 }
 0x257   :  { %v6326_v48 = vpop.f32.mrb[16].mxu1 }
 0x258   :  { %776 = vrot.lane.b32.xlu1 %v5859_v4, %s5725_s14  ;;  %v4895_v50 = vpop.f32.mrb[17].mxu1  ;;  %v2423_v21 = vsel %vm2413_vm2, %v6326_v48, -inf }
 0x259   :  { %v6330_v51 = vpop.permute.xlu0 %652  ;;  %v1038_v52 = vpop.f32.mrb[18].mxu1 }
 0x25a   :  { %5022 = vmatmul.mubr.msk.bf16.vlgmr.msra.gmra.mrb[60].mxu0 %vm844_vm1, %v523_v22  ;;  %v6337_v55 = vpop.permute.xlu1 %642  ;;  %5030 = vmatmul.mubr.msk.bf16.vlgmr.msra.gmra.mrb[52].mxu1 %vm844_vm1, %v6238_v58  ;;  %v4896_v57 = vpop.f32.mrb[19].mxu1  ;;  %v1979_v58 = vsel %vm844_vm1, %v6302_v38, 0  ;;  %v2074_v22 = vsel %vm844_vm1, %v6316_v44, 0 }
 0x25b   :  { %5034 = vmatpush3.bf16.xpose.msra.mxu0 %v1878_v54  ;;  %5042 = vmatpush3.bf16.xpose.msra.mxu1 %v1927_v53 }
 0x25c   :  { %778 = vrot.lane.b32.xlu1 %v5872_v11, %s5725_s14  ;;  %5035 = vmatprep.subr.bf16.mxu0 %v7212_v43 }
 0x25d   :  { %5043 = vmatprep.subr.bf16.mxu1 %v7212_v43  ;;  %5037 = vmatprep.mubr.msk.bf16.mxu0 %vm5721_vm0, %v7212_v43 }
 0x25e   :  { %v6347_v59 = vpop.permute.xlu0 %536  ;;  %v6349_v61 = vpop.permute.xlu1 %648  ;;  %5045 = vmatprep.mubr.msk.bf16.mxu1 %vm5721_vm0, %v7212_v43 }
 0x25f   :  { %v2172_v33 = vsel %vm844_vm1, %v6349_v61, 0 }
 0x260   :  { %784 = vrot.lane.b32.xlu1 %v5911_v34, %s5725_s14 }
 0x262   :  { %v6359_v1 = vpop.permute.xlu0 %654  ;;  %v6361_v3 = vpop.permute.xlu1 %534 }
 0x263   :  { %5036 = vmatpush3.bf16.xpose.msra.mxu0 %v1881_v63  ;;  %5044 = vmatpush3.bf16.xpose.msra.mxu1 %v1930_v62  ;;  %v2224_v40 = vsel %vm844_vm1, %v6359_v1, 0 }
 0x264   :  { %786 = vrot.lane.b32.xlu1 %v5930_v41, %s5725_s14  ;;  %5049 = vmatprep.subr.bf16.mxu0 %v7212_v43 }
 0x265   :  { %5057 = vmatprep.subr.bf16.mxu1 %v7212_v43 }
 0x266   :  { %v6367_v5 = vpop.permute.xlu0 %660  ;;  %v6369_v6 = vpop.permute.xlu1 %650 }
 0x267   :  { %v2175_v38 = vsel %vm844_vm1, %v6369_v6, 0  ;;  %v2319_v50 = vsel %vm844_vm1, %v6367_v5, 0 }
 0x26a   :  { %v6373_v47 = vpop.permute.xlu0 %540  ;;  %5038 = vmatmul.mubr.msk.bf16.vlgmr.msra.gmra.mrb[64].mxu0 %vm844_vm1, %v527_v35  ;;  %v6376_v8 = vpop.permute.xlu1 %656  ;;  %5046 = vmatmul.mubr.msk.bf16.vlgmr.msra.gmra.mrb[56].mxu1 %vm844_vm1, %v6274_v28  ;;  %v2077_v28 = vsel %vm844_vm1, %v6337_v55, 0  ;;  %v2221_v35 = vsel %vm844_vm1, %v6330_v51, 0 }
 0x26b   :  { %2415 = vmax.xlane.f32.xlu0 %v2414_v10  ;;  %5050 = vmatpush3.bf16.xpose.msra.mxu0 %v1976_v7  ;;  %v2270_v45 = vsel %vm844_vm1, %v6376_v8, 0 }
 0x26c   :  { %5058 = vmatpush3.bf16.xpose.msra.mxu1 %v2025_v12  ;;  %5051 = vmatprep.subr.bf16.mxu0 %v7212_v43 }
 0x26d   :  { %5059 = vmatprep.subr.bf16.mxu1 %v7212_v43  ;;  %5053 = vmatprep.mubr.msk.bf16.mxu0 %vm5721_vm0, %v7212_v43 }
 0x26e   :  { %v6388_v13 = vpop.permute.xlu1 %538  ;;  %5061 = vmatprep.mubr.msk.bf16.mxu1 %vm5721_vm0, %v7212_v43  ;;  %v6394_v18 = vpop.permute.xlu0 %662 }
 0x26f   :  { %2421 = vmax.xlane.f32.xlu0 %v2420_v16  ;;  %v2322_v54 = vsel %vm844_vm1, %v6394_v18, 0 }
 0x272   :  { %v6398_v20 = vpop.permute.xlu1 %658  ;;  %v6406_v0 = vpop.permute.xlu0 %544 }
 0x273   :  { %5052 = vmatpush3.bf16.xpose.msra.mxu0 %v1979_v58  ;;  %2424 = vmax.xlane.f32.xlu0 %v2423_v21  ;;  %v2273_v53 = vsel %vm844_vm1, %v6398_v20, 0 }
 0x274   :  { %5060 = vmatpush3.bf16.xpose.msra.mxu1 %v2028_v17  ;;  %5065 = vmatprep.subr.bf16.mxu0 %v7212_v43 }
 0x275   :  { %5073 = vmatprep.subr.bf16.mxu1 %v7212_v43 }
 0x276   :  { %v6408_v2 = vpop.permute.xlu1 %664  ;;  %v6420_v25 = vpop.permute.xlu0 %680 }
 0x27a   :  { %5054 = vmatmul.mubr.msk.bf16.vlgmr.msra.gmra.mrb[68].mxu0 %vm844_vm1, %v6324_v46  ;;  %v6414_v23 = vpop.permute.xlu1 %542  ;;  %v6432_v9 = vpop.permute.xlu0 %682 }
 0x27b   :  { %5062 = vmatmul.mubr.msk.bf16.vlgmr.msra.gmra.mrb[60].mxu1 %vm844_vm1, %v6310_v39  ;;  %5066 = vmatpush3.bf16.xpose.msra.mxu0 %v2074_v22 }
 0x27c   :  { %5074 = vmatpush3.bf16.xpose.msra.mxu1 %v2123_v24  ;;  %5067 = vmatprep.subr.bf16.mxu0 %v7212_v43 }
 0x27d   :  { %5075 = vmatprep.subr.bf16.mxu1 %v7212_v43  ;;  %5069 = vmatprep.mubr.msk.bf16.mxu0 %vm5721_vm0, %v7212_v43 }
 0x27e   :  { %5077 = vmatprep.mubr.msk.bf16.mxu1 %vm5721_vm0, %v7212_v43  ;;  %v6428_v27 = vpop.permute.xlu1 %666  ;;  %v6442_v15 = vpop.permute.xlu0 %686 }
 0x282   :  { %v6438_v31 = vpop.permute.xlu1 %546  ;;  %v6458_v37 = vpop.permute.xlu0 %700 }
 0x283   :  { %5068 = vmatpush3.bf16.xpose.msra.mxu0 %v2077_v28 }
 0x284   :  { %5076 = vmatpush3.bf16.xpose.msra.mxu1 %v2126_v30  ;;  %5081 = vmatprep.subr.bf16.mxu0 %v7212_v43 }
 0x285   :  { %5089 = vmatprep.subr.bf16.mxu1 %v7212_v43 }
 0x286   :  { %v6452_v36 = vpop.permute.xlu1 %676  ;;  %v6468_v42 = vpop.permute.xlu0 %702 }
 0x288   :  { %2418 = vmax.xlane.f32.xlu1 %v2417_v32 }
 0x28a   :  { %5070 = vmatmul.mubr.msk.bf16.vlgmr.msra.gmra.mrb[72].mxu0 %vm844_vm1, %v6361_v3  ;;  %v6464_v39 = vpop.permute.xlu1 %678  ;;  %v6476_v46 = vpop.permute.xlu0 %708 }
 0x28b   :  { %5078 = vmatmul.mubr.msk.bf16.vlgmr.msra.gmra.mrb[64].mxu1 %vm844_vm1, %v6347_v59  ;;  %5082 = vmatpush3.bf16.xpose.msra.mxu0 %v2172_v33  ;;  %v2368_v59 = vsel %vm844_vm1, %v6408_v2, 0 }
 0x28c   :  { %5090 = vmatpush3.bf16.xpose.msra.mxu1 %v2221_v35  ;;  %5083 = vmatprep.subr.bf16.mxu0 %v7212_v43 }
 0x28d   :  { %5091 = vmatprep.subr.bf16.mxu1 %v7212_v43  ;;  %5085 = vmatprep.mubr.msk.bf16.mxu0 %vm5721_vm0, %v7212_v43 }
 0x28e   :  { %5093 = vmatprep.mubr.msk.bf16.mxu1 %vm5721_vm0, %v7212_v43  ;;  %v6472_v44 = vpop.permute.xlu1 %684  ;;  %v6492_v52 = vpop.permute.xlu0 %710 }
 0x292   :  { %v6488_v51 = vpop.permute.xlu1 %688  ;;  %v6502_v57 = vpop.permute.xlu0 %724 }
 0x293   :  { %5084 = vmatpush3.bf16.xpose.msra.mxu0 %v2175_v38 }
 0x294   :  { %5092 = vmatpush3.bf16.xpose.msra.mxu1 %v2224_v40  ;;  %5097 = vmatprep.subr.bf16.mxu0 %v7212_v43 }
 0x295   :  { %5105 = vmatprep.subr.bf16.mxu1 %v7212_v43 }
 0x296   :  { %v6498_v55 = vpop.permute.xlu1 %704  ;;  %v6512_v62 = vpop.permute.xlu0 %726 }
 0x29a   :  { %5086 = vmatmul.mubr.msk.bf16.vlgmr.msra.gmra.mrb[76].mxu0 %vm844_vm1, %v6388_v13  ;;  %v6506_v61 = vpop.permute.xlu1 %706  ;;  %v6531_v8 = vpop.permute.xlu0 %732 }
 0x29b   :  { %5094 = vmatmul.mubr.msk.bf16.vlgmr.msra.gmra.mrb[68].mxu1 %vm844_vm1, %v6373_v47  ;;  %5098 = vmatpush3.bf16.xpose.msra.mxu0 %v2270_v45  ;;  %v2371_v47 = vsel %vm844_vm1, %v6428_v27, 0 }
 0x29c   :  { %5106 = vmatpush3.bf16.xpose.msra.mxu1 %v2319_v50  ;;  %5099 = vmatprep.subr.bf16.mxu0 %v7212_v43 }
 0x29d   :  { %5107 = vmatprep.subr.bf16.mxu1 %v7212_v43  ;;  %5101 = vmatprep.mubr.msk.bf16.mxu0 %vm5721_vm0, %v7212_v43 }
 0x29e   :  { %5109 = vmatprep.mubr.msk.bf16.mxu1 %vm5721_vm0, %v7212_v43  ;;  %v6525_v5 = vpop.permute.xlu1 %712  ;;  %v6536_v12 = vpop.permute.xlu0 %734 }
 0x2a2   :  { %v6534_v10 = vpop.permute.xlu1 %728  ;;  %v6550_v58 = vpop.permute.xlu0 %748 }
 0x2a3   :  { %5100 = vmatpush3.bf16.xpose.msra.mxu0 %v2273_v53 }
 0x2a4   :  { %5108 = vmatpush3.bf16.xpose.msra.mxu1 %v2322_v54  ;;  %5113 = vmatprep.subr.bf16.mxu0 %v7212_v43 }
 0x2a5   :  { %5121 = vmatprep.subr.bf16.mxu1 %v7212_v43 }
 0x2a6   :  { %v6543_v13 = vpop.permute.xlu1 %730  ;;  %v6560_v28 = vpop.permute.xlu0 %750 }
 0x2aa   :  { %5102 = vmatmul.mubr.msk.bf16.vlgmr.msra.gmra.mrb[80].mxu0 %vm844_vm1, %v6414_v23  ;;  %v6558_v27 = vpop.permute.xlu1 %736 }
 0x2ab   :  { %5110 = vmatmul.mubr.msk.bf16.vlgmr.msra.gmra.mrb[72].mxu1 %vm844_vm1, %v6406_v0  ;;  %5114 = vmatpush3.bf16.xpose.msra.mxu0 %v2368_v59 }
 0x2ac   :  { %5122 = vmatpush3.bf16.msra.mxu1 %v5837_v49  ;;  %5115 = vmatprep.subr.bf16.mxu0 %v7212_v43 }
 0x2ad   :  { %v6516_v63 = vpop.f32.mrb[20].mxu1  ;;  %5123 = vmatprep.subr.bf16.mxu1 %v7212_v43  ;;  %5117 = vmatprep.mubr.msk.bf16.mxu0 %vm5721_vm0, %v7212_v43 }
 0x2ae   :  { %v2426_v1 = vsel %vm2413_vm2, %v6516_v63, -inf  ;;  %5125 = vmatprep.mubr.msk.bf16.mxu1 %vm5721_vm0, %v7212_v43  ;;  %v4903_v3 = vpop.f32.mrb[21].mxu1  ;;  %v6562_v30 = vpop.permute.xlu1 %752 }
 0x2af   :  { %2427 = vmax.xlane.f32.xlu1 %v2426_v1  ;;  %v1087_v6 = vpop.f32.mrb[22].mxu1 }
 0x2b0   :  { %5124 = vmatpush3.bf16.msra.mxu1 %v5848_v60  ;;  %v4904_v7 = vpop.f32.mrb[23].mxu1 }
 0x2b1   :  { %5129 = vmatprep.subr.bf16.mxu1 %v7212_v43 }
 0x2b2   :  { %v6570_v35 = vpop.permute.xlu1 %690 }
 0x2b3   :  { %5116 = vmatpush3.bf16.xpose.msra.mxu0 %v2371_v47 }
 0x2b4   :  { %5137 = vmatprep.subr.bf16.mxu0 %v7212_v43 }
 0x2b6   :  { %v6578_v6 = vpop.permute.xlu1 %714 }
 0x2ba   :  { %5118 = vmatmul.mubr.msk.bf16.vlgmr.msra.gmra.mrb[84].mxu0 %vm844_vm1, %v6438_v31  ;;  %v6564_v31 = vpop.permute.xlu0 %756  ;;  %v6582_v47 = vpop.permute.xlu1 %738 }
 0x2bb   :  { %5138 = vmatpush3.bf16.msra.mxu0 %v5883_v19  ;;  %5141 = vmatprep.mubr.msk.bf16.mxu0 %vm5721_vm0, %v7212_v43 }
 0x2bc   :  { %5139 = vmatprep.subr.bf16.mxu0 %v7212_v43 }
 0x2bd   :  { %v6546_v16 = vpop.f32.mrb[24].mxu1  ;;  %v6548_v18 = vpop.f32.mrb[32].mxu0 }
 0x2be   :  { %v2432_v20 = vsel %vm2413_vm2, %v6546_v16, -inf  ;;  %v2429_v21 = vsel %vm2413_vm2, %v6548_v18, -inf  ;;  %v4911_v17 = vpop.f32.mrb[33].mxu0  ;;  %v4919_v0 = vpop.f32.mrb[25].mxu1 }
 0x2bf   :  { %5140 = vmatpush3.bf16.msra.mxu0 %v5898_v26  ;;  %2433 = vmax.xlane.f32.xlu1 %v2432_v20  ;;  %v1136_v2 = vpop.f32.mrb[34].mxu0  ;;  %v1185_v22 = vpop.f32.mrb[26].mxu1 }
 0x2c0   :  { %2430 = vmax.xlane.f32.xlu0 %v2429_v21  ;;  %5153 = vmatprep.subr.bf16.mxu0 %v7212_v43  ;;  %v4912_v23 = vpop.f32.mrb[35].mxu0  ;;  %v4920_v24 = vpop.f32.mrb[27].mxu1 }
 0x2c1   :  { %v6576_v3 = vpop.permute.xlu0 %758 }
 0x2c2   :  { %7220 = vst [vmem:[#allocation15_spill] sm:$0xff] %v6576_v3 }
 0x2c5   :  { %v6580_v7 = vpop.permute.xlu0 %772 }
 0x2c6   :  { %7221 = vst [vmem:[#allocation16_spill] sm:$0xff] %v6580_v7 }
 0x2cd   :  { %v6566_v32 = vpop.f32.mrb[36].mxu0  ;;  %v6568_v33 = vpop.f32.mrb[28].mxu1 }
 0x2ce   :  { %v2435_v38 = vsel %vm2413_vm2, %v6566_v32, -inf  ;;  %v2438_v40 = vsel %vm2413_vm2, %v6568_v33, -inf  ;;  %v4927_v45 = vpop.f32.mrb[37].mxu0  ;;  %v4935_v50 = vpop.f32.mrb[29].mxu1 }
 0x2cf   :  { %2436 = vmax.xlane.f32.xlu0 %v2435_v38  ;;  %2439 = vmax.xlane.f32.xlu1 %v2438_v40  ;;  %v1234_v53 = vpop.f32.mrb[38].mxu0  ;;  %v1283_v54 = vpop.f32.mrb[30].mxu1 }
 0x2d0   :  { %v4928_v59 = vpop.f32.mrb[39].mxu0  ;;  %v4936_v1 = vpop.f32.mrb[31].mxu1 }
 0x2d1   :  { %v6592_v45 = vpop.permute.xlu0 %774  ;;  %v6594_v50 = vpop.permute.xlu1 %754 }
 0x2d2   :  { %7222 = vst [vmem:[#allocation17_spill] sm:$0xff] %v6592_v45  ;;  %7223 = vst [vmem:[#allocation18_spill] sm:$0xff] %v6594_v50 }
 0x2d5   :  { %v6596_v53 = vpop.permute.xlu0 %780  ;;  %v6598_v54 = vpop.permute.xlu1 %760 }
 0x2d6   :  { %7224 = vst [vmem:[#allocation19_spill] sm:$0xff] %v6596_v53  ;;  %7225 = vst [vmem:[#allocation20_spill] sm:$0xff] %v6598_v54 }
 0x2d9   :  { %v6608_v43 = vpop.permute.xlu0 %782  ;;  %v6610_v53 = vpop.permute.xlu1 %762 }
 0x2da   :  { %7226 = vst [vmem:[#allocation21_spill] sm:$0xff] %v6608_v43  ;;  %7227 = vst [vmem:[#allocation22_spill] sm:$0xff] %v6610_v53 }
 0x2dd   :  { %v6584_v20 = vpop.f32.mrb[40].mxu0  ;;  %v6586_v21 = vpop.f32.mrb[32].mxu1 }
 0x2de   :  { %v4943_v17 = vpop.f32.mrb[41].mxu0  ;;  %v4951_v0 = vpop.f32.mrb[33].mxu1  ;;  %v2441_v2 = vsel %vm2413_vm2, %v6584_v20, -inf  ;;  %v2444_v22 = vsel %vm2413_vm2, %v6586_v21, -inf }
 0x2df   :  { %v1381_v23 = vpop.f32.mrb[34].mxu1  ;;  %2442 = vmax.xlane.f32.xlu0 %v2441_v2  ;;  %v1332_v24 = vpop.f32.mrb[42].mxu0  ;;  %2445 = vmax.xlane.f32.xlu1 %v2444_v22 }
 0x2e0   :  { %v4944_v38 = vpop.f32.mrb[43].mxu0  ;;  %v4952_v40 = vpop.f32.mrb[35].mxu1 }
 0x2e1   :  { %v6613_v54 = vpop.permute.xlu1 %776 }
 0x2e2   :  { %7228 = vst [vmem:[#allocation23_spill] sm:$0xff] %v6613_v54 }
 0x2ed   :  { %v6600_v59 = vpop.f32.mrb[44].mxu0  ;;  %v6602_v1 = vpop.f32.mrb[36].mxu1 }
 0x2ee   :  { %v4959_v17 = vpop.f32.mrb[45].mxu0  ;;  %v4967_v0 = vpop.f32.mrb[37].mxu1  ;;  %v2447_v2 = vsel %vm2413_vm2, %v6600_v59, -inf  ;;  %v2450_v40 = vsel %vm2413_vm2, %v6602_v1, -inf }
 0x2ef   :  { %v1479_v22 = vpop.f32.mrb[38].mxu1  ;;  %2448 = vmax.xlane.f32.xlu0 %v2447_v2  ;;  %v1430_v23 = vpop.f32.mrb[46].mxu0 }
 0x2f0   :  { %v4960_v24 = vpop.f32.mrb[47].mxu0  ;;  %v4968_v38 = vpop.f32.mrb[39].mxu1 }
 0x2f3   :  { %2451 = vmax.xlane.f32.xlu0 %v2450_v40 }
 0x2f8   :  { %v2416_v45 = vpop.xlane.xlu0 %2415 }
 0x2f9   :  { %v2510_v17 = vsub.f32 %v6190_v56, %v2416_v45 }
 0x2fb   :  { %v2542_v0 = vmul.f32 1.442695, %v2510_v17 }
 0x2fc   :  { %v2422_v7 = vpop.xlane.xlu0 %2421 }
 0x2fd   :  { %5465 = vpow2.f32 %v2542_v0  ;;  %v2512_v2 = vsub.f32 %v6280_v29, %v2422_v7  ;;  %v6616_v22 = vpop.f32.mrb[48].mxu0  ;;  %v6618_v23 = vpop.f32.mrb[40].mxu1 }
 0x2fe   :  { %v4975_v24 = vpop.f32.mrb[49].mxu0  ;;  %v4983_v38 = vpop.f32.mrb[41].mxu1  ;;  %v2456_v40 = vsel %vm2413_vm2, %v6618_v23, -inf  ;;  %v2453_v43 = vsel %vm2413_vm2, %v6616_v22, -inf }
 0x2ff   :  { %v2546_v56 = vmul.f32 1.442695, %v2512_v2  ;;  %v1577_v45 = vpop.f32.mrb[42].mxu1  ;;  %2457 = vmax.xlane.f32.xlu0 %v2456_v40  ;;  %v1528_v17 = vpop.f32.mrb[50].mxu0  ;;  %2454 = vmax.xlane.f32.xlu1 %v2453_v43  ;;  %v7233_v2 = vmov 0.0  }
 0x300   :  { %v4976_v0 = vpop.f32.mrb[51].mxu0  ;;  %v4984_v29 = vpop.f32.mrb[43].mxu1 }
 0x301   :  { %5467 = vpow2.f32 %v2546_v56  ;;  %v6624_v7 = vpop.permute.xlu1 %778 }
 0x302   :  { %7229 = vst [vmem:[#allocation24_spill] sm:$0xff] %v6624_v7 }
 0x305   :  { %v6633_v53 = vpop.permute.xlu1 %784 }
 0x306   :  { %7232 = vst [vmem:[#allocation27_spill] sm:$0xff] %v6633_v53 }
 0x307   :  { %v6626_v54 = vpop.eup %5465 }
 0x308   :  { %7230 = vst [vmem:[#allocation25_spill] sm:$0xff] %v6626_v54  ;;  %v2702_v24 = vpack.c.bf16 %v6626_v54, %v6626_v54 }
 0x30a   :  { %5126 = vmatmul.mubr.msk.bf16.vlgmr.msra.gmra.mrb[76].mxu1 %vm2413_vm2, %v2702_v24 }
 0x30b   :  { %v6631_v38 = vpop.eup %5467  ;;  %5130 = vmatpush3.bf16.msra.mxu1 %v5859_v4  ;;  %5133 = vmatprep.mubr.msk.bf16.mxu1 %vm5721_vm0, %v7233_v2 }
 0x30c   :  { %7231 = vst [vmem:[#allocation26_spill] sm:$0xff] %v6631_v38  ;;  %5131 = vmatprep.subr.bf16.mxu1 %v7233_v2  ;;  %v2704_v43 = vpack.c.bf16 %v6631_v38, %v6631_v38 }
 0x30d   :  { %v6641_v40 = vpop.f32.mrb[52].mxu0  ;;  %v6643_v56 = vpop.f32.mrb[44].mxu1 }
 0x30e   :  { %v4991_v45 = vpop.f32.mrb[53].mxu0  ;;  %v4999_v17 = vpop.f32.mrb[45].mxu1  ;;  %5142 = vmatmul.mubr.msk.bf16.vlgmr.msra.gmra.mrb[88].mxu0 %vm2413_vm2, %v2704_v43  ;;  %v2462_v0 = vsel %vm2413_vm2, %v6643_v56, -inf  ;;  %v2459_v29 = vsel %vm2413_vm2, %v6641_v40, -inf }
 0x30f   :  { %5132 = vmatpush3.bf16.msra.mxu1 %v5872_v11  ;;  %5154 = vmatpush3.bf16.msra.mxu0 %v6452_v36  ;;  %v1675_v24 = vpop.f32.mrb[46].mxu1  ;;  %v1626_v38 = vpop.f32.mrb[54].mxu0 }
 0x310   :  { %2463 = vmax.xlane.f32.xlu0 %v2462_v0  ;;  %2460 = vmax.xlane.f32.xlu1 %v2459_v29  ;;  %v4992_v54 = vpop.f32.mrb[55].mxu0  ;;  %v5000_v53 = vpop.f32.mrb[47].mxu1 }
 0x311   :  { %v6652_v45 = vpop.permute.xlu1 %786  ;;  %5155 = vmatprep.subr.bf16.mxu0 %v7233_v2  ;;  %5145 = vmatprep.subr.bf16.mxu1 %v7233_v2  ;;  %v2425_v36 = vpop.xlane.xlu0 %2424 }
 0x312   :  { %7234 = vst [vmem:[#allocation28_spill] sm:$0xff] %v6652_v45  ;;  %5157 = vmatprep.mubr.msk.bf16.mxu0 %vm5721_vm0, %v7233_v2  ;;  %v2513_v54 = vsub.f32 %v6326_v48, %v2425_v36 }
 0x313   :  { %5156 = vmatpush3.bf16.msra.mxu0 %v6464_v39 }
 0x314   :  { %5169 = vmatprep.subr.bf16.mxu0 %v7233_v2  ;;  %v2548_v17 = vmul.f32 1.442695, %v2513_v54 }
 0x315   :  { %v2419_v43 = vpop.xlane.xlu1 %2418 }
 0x316   :  { %v2511_v38 = vsub.f32 %v6232_v14, %v2419_v43 }
 0x318   :  { %v2544_v53 = vmul.f32 1.442695, %v2511_v38 }
 0x31a   :  { %5469 = vpow2.f32 %v2544_v53 }
 0x31b   :  { %5471 = vpow2.f32 %v2548_v17 }
 0x31d   :  { %v6662_v0 = vpop.f32.mrb[56].mxu0  ;;  %v6664_v29 = vpop.f32.mrb[48].mxu1 }
 0x31e   :  { %v5007_v24 = vpop.f32.mrb[57].mxu0  ;;  %v5015_v45 = vpop.f32.mrb[49].mxu1 }
 0x31f   :  { %v1724_v7 = vpop.f32.mrb[58].mxu0  ;;  %v1773_v50 = vpop.f32.mrb[50].mxu1 }
 0x320   :  { %v5008_v39 = vpop.f32.mrb[59].mxu0  ;;  %v5016_v3 = vpop.f32.mrb[51].mxu1 }
 0x321   :  { %800 = vrot.lane.b32.xlu1 %v5859_v4, %s5726_s15 }
 0x324   :  { %v6668_v14 = vpop.eup %5469 }
 0x325   :  { %7235 = vst [vmem:[#allocation29_spill] sm:$0xff] %v6668_v14  ;;  %v2703_v48 = vpack.c.bf16 %v6668_v14, %v6668_v14  ;;  %v6679_v3 = vpop.eup %5471 }
 0x326   :  { %796 = vrot.lane.b32.xlu0 %v5837_v49, %s5726_s15  ;;  %7236 = vst [vmem:[#allocation30_spill] sm:$0xff] %v6679_v3  ;;  %v2705_v45 = vpack.c.bf16 %v6679_v3, %v6679_v3  ;;  %v2465_v3 = vsel %vm2413_vm2, %v6662_v0, -inf }
 0x327   :  { %5134 = vmatmul.mubr.msk.bf16.vlgmr.msra.gmra.mrb[80].mxu1 %vm2413_vm2, %v2703_v48 }
 0x328   :  { %5146 = vmatpush3.bf16.msra.mxu1 %v5911_v34  ;;  %5149 = vmatprep.mubr.msk.bf16.mxu1 %vm5721_vm0, %v7233_v2 }
 0x329   :  { %5147 = vmatprep.subr.bf16.mxu1 %v7233_v2 }
 0x32c   :  { %5148 = vmatpush3.bf16.msra.mxu1 %v5930_v41 }
 0x32d   :  { %v6682_v50 = vpop.f32.mrb[60].mxu0  ;;  %v6684_v7 = vpop.f32.mrb[52].mxu1  ;;  %5161 = vmatprep.subr.bf16.mxu1 %v7233_v2 }
 0x32e   :  { %v5023_v36 = vpop.f32.mrb[61].mxu0  ;;  %v5031_v43 = vpop.f32.mrb[53].mxu1  ;;  %v2474_v14 = vsel %vm2413_vm2, %v6684_v7, -inf }
 0x32f   :  { %v1822_v38 = vpop.f32.mrb[62].mxu0  ;;  %v1871_v54 = vpop.f32.mrb[54].mxu1  ;;  %5150 = vmatmul.mubr.msk.bf16.vlgmr.msra.gmra.mrb[84].mxu1 %vm2413_vm2, %v2705_v45 }
 0x330   :  { %5162 = vmatpush3.bf16.msra.mxu1 %v6420_v25  ;;  %v5024_v53 = vpop.f32.mrb[63].mxu0  ;;  %v5032_v17 = vpop.f32.mrb[55].mxu1  ;;  %5165 = vmatprep.mubr.msk.bf16.mxu1 %vm5721_vm0, %v7233_v2 }
 0x331   :  { %5163 = vmatprep.subr.bf16.mxu1 %v7233_v2 }
 0x334   :  { %5164 = vmatpush3.bf16.msra.mxu1 %v6432_v9  ;;  %v2468_v9 = vsel %vm2413_vm2, %v6664_v29, -inf }
 0x335   :  { %5177 = vmatprep.subr.bf16.mxu1 %v7233_v2 }
 0x33c   :  { %v2428_v24 = vpop.xlane.xlu1 %2427 }
 0x33d   :  { %v6696_v39 = vpop.f32.mrb[64].mxu0  ;;  %v6698_v48 = vpop.f32.mrb[56].mxu1  ;;  %v2514_v45 = vsub.f32 %v6516_v63, %v2428_v24  ;;  %v2471_v63 = vsel %vm2413_vm2, %v6682_v50, -inf }
 0x33e   :  { %7237 = vst [vmem:[#allocation31_spill] sm:$0xff] %v6696_v39  ;;  %7238 = vst [vmem:[#allocation32_spill] sm:$0xff] %v6698_v48  ;;  %v5039_v36 = vpop.f32.mrb[65].mxu0  ;;  %v5047_v25 = vpop.f32.mrb[57].mxu1 }
 0x33f   :  { %v2550_v43 = vmul.f32 1.442695, %v2514_v45  ;;  %v1920_v38 = vpop.f32.mrb[66].mxu0  ;;  %v1969_v54 = vpop.f32.mrb[58].mxu1  ;;  %v2480_v45 = vsel %vm2413_vm2, %v6698_v48, -inf  ;;  %v2477_v36 = vsel %vm2413_vm2, %v6696_v39, -inf }
 0x340   :  { %v5040_v53 = vpop.f32.mrb[67].mxu0  ;;  %v5048_v17 = vpop.f32.mrb[59].mxu1 }
 0x341   :  { %5473 = vpow2.f32 %v2550_v43 }
 0x345   :  { %2469 = vmax.xlane.f32.xlu0 %v2468_v9  ;;  %2466 = vmax.xlane.f32.xlu1 %v2465_v3 }
 0x349   :  { %2475 = vmax.xlane.f32.xlu0 %v2474_v14  ;;  %2472 = vmax.xlane.f32.xlu1 %v2471_v63 }
 0x34b   :  { %v6709_v24 = vpop.eup %5473 }
 0x34c   :  { %v2434_v25 = vpop.xlane.xlu1 %2433  ;;  %v2706_v3 = vpack.c.bf16 %v6709_v24, %v6709_v24 }
 0x34d   :  { %2481 = vmax.xlane.f32.xlu0 %v2480_v45  ;;  %2478 = vmax.xlane.f32.xlu1 %v2477_v36  ;;  %v2516_v43 = vsub.f32 %v6546_v16, %v2434_v25  ;;  %v2431_v38 = vpop.xlane.xlu0 %2430  ;;  %v6718_v54 = vpop.f32.mrb[68].mxu0 }
 0x34e   :  { %v6720_v14 = vpop.f32.mrb[60].mxu1  ;;  %v2515_v53 = vsub.f32 %v6548_v18, %v2431_v38  ;;  %v5055_v17 = vpop.f32.mrb[69].mxu0  ;;  %5158 = vmatmul.mubr.msk.bf16.vlgmr.msra.gmra.mrb[92].mxu0 %vm2413_vm2, %v2706_v3  ;;  %v2483_v9 = vsel %vm2413_vm2, %v6718_v54, -inf }
 0x34f   :  { %v2554_v63 = vmul.f32 1.442695, %v2516_v43  ;;  %v5063_v39 = vpop.f32.mrb[61].mxu1  ;;  %v2018_v48 = vpop.f32.mrb[70].mxu0  ;;  %5170 = vmatpush3.bf16.msra.mxu0 %v6472_v44  ;;  %v2486_v16 = vsel %vm2413_vm2, %v6720_v14, -inf  ;;  %5173 = vmatprep.mubr.msk.bf16.mxu0 %vm5721_vm0, %v7233_v2 }
 0x350   :  { %v2552_v45 = vmul.f32 1.442695, %v2515_v53  ;;  %v2067_v36 = vpop.f32.mrb[62].mxu1  ;;  %v5056_v18 = vpop.f32.mrb[71].mxu0  ;;  %5171 = vmatprep.subr.bf16.mxu0 %v7233_v2 }
 0x351   :  { %5475 = vpow2.f32 %v2554_v63  ;;  %v5064_v25 = vpop.f32.mrb[63].mxu1  ;;  %2487 = vmax.xlane.f32.xlu0 %v2486_v16  ;;  %2484 = vmax.xlane.f32.xlu1 %v2483_v9 }
 0x352   :  { %5477 = vpow2.f32 %v2552_v45 }
 0x353   :  { %5172 = vmatpush3.bf16.msra.mxu0 %v6442_v15 }
 0x354   :  { %5185 = vmatprep.subr.bf16.mxu0 %v7233_v2 }
 0x35b   :  { %v6734_v44 = vpop.eup %5475 }
 0x35c   :  { %v6736_v39 = vpop.eup %5477  ;;  %v2437_v48 = vpop.xlane.xlu0 %2436  ;;  %v2708_v43 = vpack.c.bf16 %v6734_v44, %v6734_v44 }
 0x35d   :  { %v2440_v3 = vpop.xlane.xlu1 %2439  ;;  %v2517_v38 = vsub.f32 %v6566_v32, %v2437_v48  ;;  %v6742_v17 = vpop.f32.mrb[72].mxu0  ;;  %v2707_v15 = vpack.c.bf16 %v6736_v39, %v6736_v39 }
 0x35e   :  { %v2518_v53 = vsub.f32 %v6568_v33, %v2440_v3  ;;  %v6746_v9 = vpop.f32.mrb[64].mxu1  ;;  %v5071_v63 = vpop.f32.mrb[73].mxu0  ;;  %5174 = vmatmul.mubr.msk.bf16.vlgmr.msra.gmra.mrb[96].mxu0 %vm2413_vm2, %v2708_v43  ;;  %v2489_v16 = vsel %vm2413_vm2, %v6742_v17, -inf }
 0x35f   :  { %v2556_v45 = vmul.f32 1.442695, %v2517_v38  ;;  %v5079_v18 = vpop.f32.mrb[65].mxu1  ;;  %5186 = vmatpush3.bf16.msra.mxu0 %v6458_v37  ;;  %v2492_v32 = vsel %vm2413_vm2, %v6746_v9, -inf  ;;  %2490 = vmax.xlane.f32.xlu1 %v2489_v16  ;;  %v2116_v25 = vpop.f32.mrb[74].mxu0 }
 0x360   :  { %v2558_v36 = vmul.f32 1.442695, %v2518_v53  ;;  %v2165_v33 = vpop.f32.mrb[66].mxu1  ;;  %2493 = vmax.xlane.f32.xlu0 %v2492_v32  ;;  %5166 = vmatmul.mubr.msk.bf16.vlgmr.msra.gmra.mrb[88].mxu1 %vm2413_vm2, %v2707_v15  ;;  %v5072_v48 = vpop.f32.mrb[75].mxu0 }
 0x361   :  { %5479 = vpow2.f32 %v2556_v45  ;;  %5178 = vmatpush3.bf16.msra.mxu1 %v6488_v51  ;;  %v5080_v3 = vpop.f32.mrb[67].mxu1  ;;  %5187 = vmatprep.subr.bf16.mxu0 %v7233_v2 }
 0x362   :  { %5481 = vpow2.f32 %v2558_v36  ;;  %5179 = vmatprep.subr.bf16.mxu1 %v7233_v2  ;;  %5181 = vmatprep.mubr.msk.bf16.mxu1 %vm5721_vm0, %v7233_v2 }
 0x363   :  { %5188 = vmatpush3.bf16.msra.mxu0 %v6468_v42  ;;  %5189 = vmatprep.mubr.msk.bf16.mxu0 %vm5721_vm0, %v7233_v2 }
 0x364   :  { %5201 = vmatprep.subr.bf16.mxu0 %v7233_v2 }
 0x365   :  { %5180 = vmatpush3.bf16.msra.mxu1 %v6570_v35 }
 0x366   :  { %5193 = vmatprep.subr.bf16.mxu1 %v7233_v2 }
 0x36b   :  { %v6766_v37 = vpop.eup %5479 }
 0x36c   :  { %v6768_v51 = vpop.eup %5481  ;;  %v2443_v43 = vpop.xlane.xlu0 %2442  ;;  %v2709_v53 = vpack.c.bf16 %v6766_v37, %v6766_v37 }
 0x36d   :  { %v2446_v38 = vpop.xlane.xlu1 %2445  ;;  %v2519_v42 = vsub.f32 %v6584_v20, %v2443_v43  ;;  %v6774_v63 = vpop.f32.mrb[76].mxu0  ;;  %v2710_v35 = vpack.c.bf16 %v6768_v51, %v6768_v51 }
 0x36e   :  { %v2520_v15 = vsub.f32 %v6586_v21, %v2446_v38  ;;  %v6778_v16 = vpop.f32.mrb[68].mxu1  ;;  %v5087_v45 = vpop.f32.mrb[77].mxu0  ;;  %5182 = vmatmul.mubr.msk.bf16.vlgmr.msra.gmra.mrb[92].mxu1 %vm2413_vm2, %v2709_v53  ;;  %v2495_v36 = vsel %vm2413_vm2, %v6774_v63, -inf }
 0x36f   :  { %v2560_v18 = vmul.f32 1.442695, %v2519_v42  ;;  %v5095_v33 = vpop.f32.mrb[69].mxu1  ;;  %5190 = vmatmul.mubr.msk.bf16.vlgmr.msra.gmra.mrb[100].mxu0 %vm2413_vm2, %v2710_v35  ;;  %5194 = vmatpush3.bf16.msra.mxu1 %v6498_v55  ;;  %v2498_v20 = vsel %vm2413_vm2, %v6778_v16, -inf  ;;  %v2214_v25 = vpop.f32.mrb[78].mxu0 }
 0x370   :  { %v2562_v32 = vmul.f32 1.442695, %v2520_v15  ;;  %5202 = vmatpush3.bf16.msra.mxu0 %v6476_v46  ;;  %v2263_v21 = vpop.f32.mrb[70].mxu1  ;;  %2499 = vmax.xlane.f32.xlu0 %v2498_v20  ;;  %v5088_v48 = vpop.f32.mrb[79].mxu0 }
 0x371   :  { %5483 = vpow2.f32 %v2560_v18  ;;  %2496 = vmax.xlane.f32.xlu1 %v2495_v36  ;;  %v5096_v3 = vpop.f32.mrb[71].mxu1  ;;  %5195 = vmatprep.subr.bf16.mxu1 %v7233_v2 }
 0x372   :  { %5485 = vpow2.f32 %v2562_v32  ;;  %5203 = vmatprep.subr.bf16.mxu0 %v7233_v2  ;;  %5197 = vmatprep.mubr.msk.bf16.mxu1 %vm5721_vm0, %v7233_v2 }
 0x373   :  { %5196 = vmatpush3.bf16.msra.mxu1 %v6506_v61  ;;  %5205 = vmatprep.mubr.msk.bf16.mxu0 %vm5721_vm0, %v7233_v2 }
 0x374   :  { %5204 = vmatpush3.bf16.msra.mxu0 %v6492_v52  ;;  %5209 = vmatprep.subr.bf16.mxu1 %v7233_v2 }
 0x375   :  { %5217 = vmatprep.subr.bf16.mxu0 %v7233_v2 }
 0x37b   :  { %v6798_v46 = vpop.eup %5483 }
 0x37c   :  { %v6800_v55 = vpop.eup %5485  ;;  %v2449_v43 = vpop.xlane.xlu0 %2448  ;;  %v2711_v38 = vpack.c.bf16 %v6798_v46, %v6798_v46 }
 0x37d   :  { %v2521_v53 = vsub.f32 %v6600_v59, %v2449_v43  ;;  %v6805_v61 = vpop.f32.mrb[80].mxu0  ;;  %v2712_v42 = vpack.c.bf16 %v6800_v55, %v6800_v55 }
 0x37e   :  { %v6809_v52 = vpop.f32.mrb[72].mxu1  ;;  %v5103_v15 = vpop.f32.mrb[81].mxu0  ;;  %5198 = vmatmul.mubr.msk.bf16.vlgmr.msra.gmra.mrb[96].mxu1 %vm2413_vm2, %v2711_v38  ;;  %v2501_v35 = vsel %vm2413_vm2, %v6805_v61, -inf }
 0x37f   :  { %v2564_v45 = vmul.f32 1.442695, %v2521_v53  ;;  %v5111_v36 = vpop.f32.mrb[73].mxu1  ;;  %5206 = vmatmul.mubr.msk.bf16.vlgmr.msra.gmra.mrb[104].mxu0 %vm2413_vm2, %v2712_v42  ;;  %5210 = vmatpush3.bf16.msra.mxu1 %v6525_v5  ;;  %v2504_v59 = vsel %vm2413_vm2, %v6809_v52, -inf  ;;  %v2312_v18 = vpop.f32.mrb[82].mxu0 }
 0x380   :  { %5218 = vmatpush3.bf16.msra.mxu0 %v6502_v57  ;;  %v2361_v32 = vpop.f32.mrb[74].mxu1  ;;  %2505 = vmax.xlane.f32.xlu0 %v2504_v59  ;;  %v2452_v33 = vpop.xlane.xlu0 %2451 }
 0x381   :  { %5487 = vpow2.f32 %v2564_v45  ;;  %2502 = vmax.xlane.f32.xlu1 %v2501_v35  ;;  %v5112_v20 = vpop.f32.mrb[75].mxu1  ;;  %v2522_v21 = vsub.f32 %v6602_v1, %v2452_v33  ;;  %v5104_v25 = vpop.f32.mrb[83].mxu0  ;;  %5211 = vmatprep.subr.bf16.mxu1 %v7233_v2 }
 0x382   :  { %5219 = vmatprep.subr.bf16.mxu0 %v7233_v2  ;;  %5213 = vmatprep.mubr.msk.bf16.mxu1 %vm5721_vm0, %v7233_v2 }
 0x383   :  { %v2566_v5 = vmul.f32 1.442695, %v2522_v21  ;;  %5212 = vmatpush3.bf16.msra.mxu1 %v6578_v6  ;;  %5221 = vmatprep.mubr.msk.bf16.mxu0 %vm5721_vm0, %v7233_v2 }
 0x384   :  { %5220 = vmatpush3.bf16.msra.mxu0 %v6512_v62  ;;  %5225 = vmatprep.subr.bf16.mxu1 %v7233_v2 }
 0x385   :  { %5489 = vpow2.f32 %v2566_v5  ;;  %5233 = vmatprep.subr.bf16.mxu0 %v7233_v2 }
 0x38b   :  { %v6830_v57 = vpop.eup %5487 }
 0x38c   :  { %v2458_v1 = vpop.xlane.xlu0 %2457  ;;  %v2455_v48 = vpop.xlane.xlu1 %2454  ;;  %v2713_v3 = vpack.c.bf16 %v6830_v57, %v6830_v57 }
 0x38d   :  { %v2524_v43 = vsub.f32 %v6618_v23, %v2458_v1  ;;  %v2523_v6 = vsub.f32 %v6616_v22, %v2455_v48  ;;  %v6836_v38 = vpop.f32.mrb[84].mxu0  ;;  %v2633_v1 = vsel %vm2413_vm2, %v6798_v46, 0.0 }
 0x38e   :  { %v5119_v53 = vpop.f32.mrb[85].mxu0  ;;  %5214 = vmatmul.mubr.msk.bf16.vlgmr.msra.gmra.mrb[100].mxu1 %vm2413_vm2, %v2713_v3  ;;  %v2507_v62 = vsel %vm2413_vm2, %v6836_v38, -inf }
 0x38f   :  { %v6841_v42 = vpop.eup %5489  ;;  %v2570_v15 = vmul.f32 1.442695, %v2524_v43  ;;  %v2568_v35 = vmul.f32 1.442695, %v2523_v6  ;;  %5226 = vmatpush3.bf16.msra.mxu1 %v6534_v10  ;;  %v2410_v45 = vpop.f32.mrb[86].mxu0  ;;  %2508 = vmax.xlane.f32.xlu1 %v2507_v62  ;;  %v2621_v6 = vsel %vm2413_vm2, %v6736_v39, 0.0 }
 0x390   :  { %v5120_v36 = vpop.f32.mrb[87].mxu0  ;;  %5227 = vmatprep.subr.bf16.mxu1 %v7233_v2  ;;  %v2714_v22 = vpack.c.bf16 %v6841_v42, %v6841_v42  ;;  %5229 = vmatprep.mubr.msk.bf16.mxu1 %vm5721_vm0, %v7233_v2  ;;  %v2639_v53 = vsel %vm2413_vm2, %v6830_v57, 0.0 }
 0x391   :  { %5491 = vpow2.f32 %v2570_v15  ;;  %v2630_v36 = vsel %vm2413_vm2, %v6768_v51, 0.0 }
 0x392   :  { %5493 = vpow2.f32 %v2568_v35  ;;  %5222 = vmatmul.mubr.msk.bf16.vlgmr.msra.gmra.mrb[108].mxu0 %vm2413_vm2, %v2714_v22 }
 0x393   :  { %5228 = vmatpush3.bf16.msra.mxu1 %v6543_v13  ;;  %5234 = vmatpush3.bf16.msra.mxu0 %v6531_v8 }
 0x394   :  { %5235 = vmatprep.subr.bf16.mxu0 %v7233_v2  ;;  %5237 = vmatprep.mubr.msk.bf16.mxu0 %vm5721_vm0, %v7233_v2 }
 0x395   :  { %5241 = vmatprep.subr.bf16.mxu1 %v7233_v2 }
 0x396   :  { %798 = vrot.lane.b32.xlu0 %v5848_v60, %s5726_s15 }
 0x397   :  { %5236 = vmatpush3.bf16.msra.mxu0 %v6536_v12 }
 0x398   :  { %5249 = vmatprep.subr.bf16.mxu0 %v7233_v2 }
 0x39a   :  { %804 = vrot.lane.b32.xlu0 %v5883_v19, %s5726_s15 }
 0x39b   :  { %v6862_v10 = vpop.eup %5491 }
 0x39c   :  { %v6864_v8 = vpop.eup %5493  ;;  %v2716_v13 = vpack.c.bf16 %v6862_v10, %v6862_v10 }
 0x39d   :  { %v2464_v23 = vpop.xlane.xlu0 %2463  ;;  %v2461_v59 = vpop.xlane.xlu1 %2460  ;;  %v2715_v18 = vpack.c.bf16 %v6864_v8, %v6864_v8  ;;  %v2645_v39 = vsel %vm2413_vm2, %v6864_v8, 0.0 }
 0x39e   :  { %v2526_v32 = vsub.f32 %v6643_v56, %v2464_v23  ;;  %v2525_v12 = vsub.f32 %v6641_v40, %v2461_v59  ;;  %806 = vrot.lane.b32.xlu0 %v5898_v26, %s5726_s15  ;;  %5238 = vmatmul.mubr.msk.bf16.vlgmr.msra.gmra.mrb[112].mxu0 %vm2413_vm2, %v2716_v13 }
 0x39f   :  { %5230 = vmatmul.mubr.msk.bf16.vlgmr.msra.gmra.mrb[104].mxu1 %vm2413_vm2, %v2715_v18  ;;  %5250 = vmatpush3.bf16.msra.mxu0 %v6550_v58 }
 0x3a0   :  { %v2574_v33 = vmul.f32 1.442695, %v2526_v32  ;;  %v2572_v20 = vmul.f32 1.442695, %v2525_v12  ;;  %5242 = vmatpush3.bf16.msra.mxu1 %v6558_v27  ;;  %802 = vrot.lane.b32.xlu1 %v5872_v11, %s5726_s15 }
 0x3a1   :  { %5243 = vmatprep.subr.bf16.mxu1 %v7233_v2  ;;  %5251 = vmatprep.subr.bf16.mxu0 %v7233_v2 }
 0x3a2   :  { %5495 = vpow2.f32 %v2574_v33  ;;  %820 = vrot.lane.b32.xlu0 %v5837_v49, %s5727_s16  ;;  %5245 = vmatprep.mubr.msk.bf16.mxu1 %vm5721_vm0, %v7233_v2 }
 0x3a3   :  { %5497 = vpow2.f32 %v2572_v20  ;;  %5252 = vmatpush3.bf16.msra.mxu0 %v6560_v28  ;;  %5253 = vmatprep.mubr.msk.bf16.mxu0 %vm5721_vm0, %v7233_v2  ;;  %v6936_v28 = vpop.permute.xlu1 %800 }
 0x3a4   :  { %5244 = vmatpush3.bf16.msra.mxu1 %v6582_v47  ;;  %808 = vrot.lane.b32.xlu1 %v5911_v34, %s5726_s15 }
 0x3a5   :  { %5257 = vmatprep.subr.bf16.mxu1 %v7233_v2  ;;  %5265 = vmatprep.subr.bf16.mxu0 %v7233_v2 }
 0x3a6   :  { %822 = vrot.lane.b32.xlu0 %v5848_v60, %s5727_s16 }
 0x3a8   :  { %810 = vrot.lane.b32.xlu1 %v5930_v41, %s5726_s15 }
 0x3aa   :  { %828 = vrot.lane.b32.xlu0 %v5883_v19, %s5727_s16  ;;  %v7240_v19 = vld [vmem:[#allocation18_spill] sm:$0xff] }
 0x3ac   :  { %v6900_v49 = vpop.eup %5495  ;;  %824 = vrot.lane.b32.xlu1 %v5859_v4, %s5727_s16  ;;  %v7239_v4 = vld [vmem:[#allocation15_spill] sm:$0xff] }
 0x3ad   :  { %v6904_v58 = vpop.eup %5497  ;;  %v2718_v27 = vpack.c.bf16 %v6900_v49, %v6900_v49 }
 0x3ae   :  { %830 = vrot.lane.b32.xlu0 %v5898_v26, %s5727_s16  ;;  %v2717_v60 = vpack.c.bf16 %v6904_v58, %v6904_v58  ;;  %v6934_v26 = vpop.permute.xlu0 %796 }
 0x3af   :  { %5254 = vmatmul.mubr.msk.bf16.vlgmr.msra.gmra.mrb[116].mxu0 %vm2413_vm2, %v2718_v27  ;;  %v2636_v27 = vsel %vm2413_vm2, %v6800_v55, 0.0  ;;  %v7245_v55 = vld [vmem:[#allocation17_spill] sm:$0xff] }
 0x3b0   :  { %5246 = vmatmul.mubr.msk.bf16.vlgmr.msra.gmra.mrb[108].mxu1 %vm2413_vm2, %v2717_v60  ;;  %5266 = vmatpush3.bf16.msra.mxu0 %v6564_v31  ;;  %v7244_v60 = vld [vmem:[#allocation20_spill] sm:$0xff] }
 0x3b1   :  { %5258 = vmatpush3.bf16.msra.mxu1 %v6562_v30  ;;  %826 = vrot.lane.b32.xlu1 %v5872_v11, %s5727_s16  ;;  %v2618_v11 = vsel %vm2413_vm2, %v6709_v24, 0.0  ;;  %v2624_v30 = vsel %vm2413_vm2, %v6734_v44, 0.0 }
 0x3b2   :  { %5259 = vmatprep.subr.bf16.mxu1 %v7233_v2  ;;  %5267 = vmatprep.subr.bf16.mxu0 %v7233_v2 }
 0x3b3   :  { %5261 = vmatprep.mubr.msk.bf16.mxu1 %vm5721_vm0, %v7233_v2  ;;  %5269 = vmatprep.mubr.msk.bf16.mxu0 %vm5721_vm0, %v7233_v2 }
 0x3b4   :  { %5268 = vmatpush3.bf16.msra.mxu0 %v7239_v4  ;;  %v2651_v4 = vsel %vm2413_vm2, %v6904_v58, 0.0  ;;  %v7246_v58 = vld [vmem:[#allocation22_spill] sm:$0xff] }
 0x3b5   :  { %5260 = vmatpush3.bf16.msra.mxu1 %v7240_v19  ;;  %832 = vrot.lane.b32.xlu1 %v5911_v34, %s5727_s16 }
 0x3b6   :  { %5273 = vmatprep.subr.bf16.mxu1 %v7233_v2  ;;  %5281 = vmatprep.subr.bf16.mxu0 %v7233_v2 }
 0x3b9   :  { %834 = vrot.lane.b32.xlu1 %v5930_v41, %s5727_s16  ;;  %v2627_v41 = vsel %vm2413_vm2, %v6766_v37, 0.0  ;;  %v7241_v37 = vld [vmem:[#allocation32_spill] sm:$0xff] }
 0x3cd   :  { %2619 = vadd.xlane.f32.xlu0 %v2618_v11 }
 0x3d1   :  { %2625 = vadd.xlane.f32.xlu0 %v2624_v30 }
 0x3d2   :  { %v2470_v34 = vpop.xlane.xlu0 %2469  ;;  %v2467_v31 = vpop.xlane.xlu1 %2466 }
 0x3d3   :  { %v2528_v47 = vsub.f32 %v6664_v29, %v2470_v34  ;;  %v2527_v40 = vsub.f32 %v6662_v0, %v2467_v31  ;;  %v2642_v34 = vsel %vm2413_vm2, %v6841_v42, 0.0 }
 0x3d5   :  { %v2578_v56 = vmul.f32 1.442695, %v2528_v47  ;;  %v2576_v24 = vmul.f32 1.442695, %v2527_v40  ;;  %2628 = vadd.xlane.f32.xlu0 %v2627_v41 }
 0x3d6   :  { %v2476_v21 = vpop.xlane.xlu0 %2475  ;;  %v2473_v25 = vpop.xlane.xlu1 %2472 }
 0x3d7   :  { %5499 = vpow2.f32 %v2578_v56  ;;  %v2530_v5 = vsub.f32 %v6684_v7, %v2476_v21  ;;  %v2529_v44 = vsub.f32 %v6682_v50, %v2473_v25  ;;  %v7242_v7 = vld [vmem:[#allocation31_spill] sm:$0xff]  ;;  %v2648_v21 = vsel %vm2413_vm2, %v6862_v10, 0.0 }
 0x3d8   :  { %5501 = vpow2.f32 %v2576_v24  ;;  %v7247_v56 = vld [vmem:[#allocation19_spill] sm:$0xff]  ;;  %v2654_v10 = vsel %vm2413_vm2, %v6900_v49, 0.0 }
 0x3d9   :  { %v2582_v29 = vmul.f32 1.442695, %v2530_v5  ;;  %2634 = vadd.xlane.f32.xlu0 %v2633_v1  ;;  %v2580_v0 = vmul.f32 1.442695, %v2529_v44  ;;  %v7248_v44 = vld [vmem:[#allocation23_spill] sm:$0xff] }
 0x3da   :  { %v2482_v48 = vpop.xlane.xlu0 %2481  ;;  %v2479_v3 = vpop.xlane.xlu1 %2478 }
 0x3db   :  { %v2532_v43 = vsub.f32 %v7241_v37, %v2482_v48  ;;  %5503 = vpow2.f32 %v2582_v29  ;;  %v2531_v50 = vsub.f32 %v7242_v7, %v2479_v3  ;;  %v7250_v3 = vld [vmem:[#allocation24_spill] sm:$0xff]  ;;  %v7251_v7 = vld [vmem:[#allocation27_spill] sm:$0xff] }
 0x3dc   :  { %5505 = vpow2.f32 %v2580_v0 }
 0x3dd   :  { %2622 = vadd.xlane.f32.xlu1 %v2621_v6  ;;  %2640 = vadd.xlane.f32.xlu0 %v2639_v53  ;;  %v6954_v62 = vpop.f32.mrb[76].mxu1  ;;  %v2586_v35 = vmul.f32 1.442695, %v2532_v43  ;;  %v2584_v57 = vmul.f32 1.442695, %v2531_v50 }
 0x3de   :  { %v2485_v46 = vpop.xlane.xlu1 %2484  ;;  %v5127_v15 = vpop.f32.mrb[77].mxu1 }
 0x3df   :  { %v2774_v45 = vpop.f32.mrb[78].mxu1  ;;  %v2533_v13 = vsub.f32 %v6718_v54, %v2485_v46  ;;  %5507 = vpow2.f32 %v2586_v35  ;;  %v7243_v54 = vld [vmem:[#allocation16_spill] sm:$0xff]  ;;  %v2488_v30 = vpop.xlane.xlu0 %2487 }
 0x3e0   :  { %v5128_v23 = vpop.f32.mrb[79].mxu1  ;;  %5509 = vpow2.f32 %v2584_v57  ;;  %v2534_v41 = vsub.f32 %v6720_v14, %v2488_v30  ;;  %v7252_v46 = vld [vmem:[#allocation28_spill] sm:$0xff] }
 0x3e1   :  { %v6960_v22 = vpop.eup %5499  ;;  %2631 = vadd.xlane.f32.xlu1 %v2630_v36  ;;  %2646 = vadd.xlane.f32.xlu0 %v2645_v39  ;;  %v6963_v59 = vpop.f32.mrb[88].mxu0  ;;  %v2588_v20 = vmul.f32 1.442695, %v2533_v13 }
 0x3e2   :  { %v5502_v18 = vpop.eup %5501  ;;  %v5143_v32 = vpop.f32.mrb[89].mxu0  ;;  %v2720_v12 = vpack.c.bf16 %v6960_v22, %v6960_v22  ;;  %v2590_v0 = vmul.f32 1.442695, %v2534_v41  ;;  %v2660_v49 = vsel %vm2413_vm2, %v6960_v22, 0.0 }
 0x3e3   :  { %v2860_v33 = vpop.f32.mrb[90].mxu0  ;;  %v2719_v51 = vpack.c.bf16 %v5502_v18, %v5502_v18  ;;  %5511 = vpow2.f32 %v2588_v20  ;;  %v2657_v31 = vsel %vm2413_vm2, %v5502_v18, 0.0 }
 0x3e4   :  { %5270 = vmatmul.mubr.msk.bf16.vlgmr.msra.gmra.mrb[120].mxu0 %vm2413_vm2, %v2720_v12  ;;  %v5144_v8 = vpop.f32.mrb[91].mxu0 }
 0x3e5   :  { %5262 = vmatmul.mubr.msk.bf16.vlgmr.msra.gmra.mrb[112].mxu1 %vm2413_vm2, %v2719_v51  ;;  %5282 = vmatpush3.bf16.msra.mxu0 %v7243_v54  ;;  %v6975_v19 = vpop.eup %5503 }
 0x3e6   :  { %5274 = vmatpush3.bf16.msra.mxu1 %v7244_v60  ;;  %2637 = vadd.xlane.f32.xlu1 %v2636_v27  ;;  %v5506_v11 = vpop.eup %5505  ;;  %v2722_v47 = vpack.c.bf16 %v6975_v19, %v6975_v19 }
 0x3e7   :  { %2652 = vadd.xlane.f32.xlu0 %v2651_v4  ;;  %5275 = vmatprep.subr.bf16.mxu1 %v7233_v2  ;;  %v2721_v40 = vpack.c.bf16 %v5506_v11, %v5506_v11  ;;  %v2663_v14 = vsel %vm2413_vm2, %v5506_v11, 0.0 }
 0x3e8   :  { %5283 = vmatprep.subr.bf16.mxu0 %v7233_v2  ;;  %5277 = vmatprep.mubr.msk.bf16.mxu1 %vm5721_vm0, %v7233_v2 }
 0x3e9   :  { %5284 = vmatpush3.bf16.msra.mxu0 %v7245_v55  ;;  %5285 = vmatprep.mubr.msk.bf16.mxu0 %vm5721_vm0, %v7233_v2  ;;  %v5508_v5 = vpop.eup %5507 }
 0x3ea   :  { %5276 = vmatpush3.bf16.msra.mxu1 %v7246_v58  ;;  %2643 = vadd.xlane.f32.xlu1 %v2642_v34  ;;  %v5510_v1 = vpop.eup %5509  ;;  %v2672_v13 = vsel %vm2413_vm2, %v5508_v5, 0.0 }
 0x3eb   :  { %2658 = vadd.xlane.f32.xlu0 %v2657_v31  ;;  %5289 = vmatprep.subr.bf16.mxu1 %v7233_v2  ;;  %v2669_v37 = vsel %vm2413_vm2, %v5510_v1, 0.0  ;;  %v2723_v6 = vpack.c.bf16 %v5510_v1, %v5510_v1 }
 0x3ec   :  { %5297 = vmatprep.subr.bf16.mxu0 %v7233_v2  ;;  %5286 = vmatmul.mubr.msk.bf16.vlgmr.msra.gmra.mrb[124].mxu0 %vm2413_vm2, %v2722_v47  ;;  %v2491_v42 = vpop.xlane.xlu1 %2490 }
 0x3ed   :  { %5278 = vmatmul.mubr.msk.bf16.vlgmr.msra.gmra.mrb[116].mxu1 %vm2413_vm2, %v2721_v40  ;;  %5298 = vmatpush3.bf16.msra.mxu0 %v7247_v56  ;;  %v2494_v24 = vpop.xlane.xlu0 %2493  ;;  %v2535_v25 = vsub.f32 %v6742_v17, %v2491_v42  ;;  %v7249_v17 = vld [vmem:[#allocation21_spill] sm:$0xff]  ;;  %v5512_v43 = vpop.eup %5511 }
 0x3ee   :  { %5290 = vmatpush3.bf16.msra.mxu1 %v7248_v44  ;;  %2649 = vadd.xlane.f32.xlu1 %v2648_v21  ;;  %v2536_v48 = vsub.f32 %v6746_v9, %v2494_v24  ;;  %v2724_v9 = vpack.c.bf16 %v5508_v5, %v5508_v5  ;;  %v2675_v50 = vsel %vm2413_vm2, %v5512_v43, 0.0  ;;  %v2725_v36 = vpack.c.bf16 %v5512_v43, %v5512_v43 }
 0x3ef   :  { %2664 = vadd.xlane.f32.xlu0 %v2663_v14  ;;  %v2592_v29 = vmul.f32 1.442695, %v2535_v25  ;;  %5291 = vmatprep.subr.bf16.mxu1 %v7233_v2 }
 0x3f0   :  { %5299 = vmatprep.subr.bf16.mxu0 %v7233_v2  ;;  %5293 = vmatprep.mubr.msk.bf16.mxu1 %vm5721_vm0, %v7233_v2  ;;  %v2594_v53 = vmul.f32 1.442695, %v2536_v48 }
 0x3f1   :  { %5513 = vpow2.f32 %v2592_v29  ;;  %5300 = vmatpush3.bf16.msra.mxu0 %v7249_v17  ;;  %5301 = vmatprep.mubr.msk.bf16.mxu0 %vm5721_vm0, %v7233_v2  ;;  %v7253_v17 = vld [vmem:[#allocation25_spill] sm:$0xff] }
 0x3f2   :  { %5292 = vmatpush3.bf16.msra.mxu1 %v7250_v3  ;;  %2655 = vadd.xlane.f32.xlu1 %v2654_v10  ;;  %5515 = vpow2.f32 %v2590_v0 }
 0x3f3   :  { %2670 = vadd.xlane.f32.xlu0 %v2669_v37  ;;  %5305 = vmatprep.subr.bf16.mxu1 %v7233_v2  ;;  %5517 = vpow2.f32 %v2594_v53 }
 0x3f4   :  { %5313 = vmatprep.subr.bf16.mxu0 %v7233_v2  ;;  %5302 = vmatmul.mubr.msk.bf16.vlgmr.msra.gmra.mrb[128].mxu0 %vm2413_vm2, %v2724_v9 }
 0x3f5   :  { %5294 = vmatmul.mubr.msk.bf16.vlgmr.msra.gmra.mrb[120].mxu1 %vm2413_vm2, %v2723_v6  ;;  %5314 = vmatpush3.bf16.msra.mxu0 %v6934_v26  ;;  %v2666_v26 = vsel %vm2413_vm2, %v6975_v19, 0.0 }
 0x3f6   :  { %5306 = vmatpush3.bf16.msra.mxu1 %v7251_v7  ;;  %2661 = vadd.xlane.f32.xlu1 %v2660_v49  ;;  %v7254_v7 = vld [vmem:[#allocation26_spill] sm:$0xff] }
 0x3f7   :  { %2676 = vadd.xlane.f32.xlu0 %v2675_v50  ;;  %5307 = vmatprep.subr.bf16.mxu1 %v7233_v2  ;;  %v2612_v50 = vsel %vm2413_vm2, %v7254_v7, 0.0 }
 0x3f8   :  { %5309 = vmatprep.mubr.msk.bf16.mxu1 %vm5721_vm0, %v7233_v2  ;;  %5315 = vmatprep.subr.bf16.mxu0 %v7233_v2 }
 0x3f9   :  { %5317 = vmatprep.mubr.msk.bf16.mxu0 %vm5721_vm0, %v7233_v2 }
 0x3fa   :  { %5308 = vmatpush3.bf16.msra.mxu1 %v7252_v46  ;;  %2667 = vadd.xlane.f32.xlu1 %v2666_v26  ;;  %v7031_v15 = vpop.f32.mrb[80].mxu1 }
 0x3fb   :  { %v7033_v35 = vpop.eup %5513  ;;  %5321 = vmatprep.subr.bf16.mxu1 %v7233_v2  ;;  %v5135_v45 = vpop.f32.mrb[81].mxu1 }
 0x3fc   :  { %v2817_v39 = vpop.f32.mrb[82].mxu1  ;;  %v2681_v22 = vsel %vm2413_vm2, %v7033_v35, 0.0  ;;  %v5516_v18 = vpop.eup %5515  ;;  %v2727_v37 = vpack.c.bf16 %v7033_v35, %v7033_v35 }
 0x3fd   :  { %5310 = vmatmul.mubr.msk.bf16.vlgmr.msra.gmra.mrb[124].mxu1 %vm2413_vm2, %v2725_v36  ;;  %v2500_v57 = vpop.xlane.xlu0 %2499  ;;  %v5136_v23 = vpop.f32.mrb[83].mxu1  ;;  %2682 = vadd.xlane.f32.xlu0 %v2681_v22  ;;  %v2678_v20 = vsel %vm2413_vm2, %v5516_v18, 0.0  ;;  %v2726_v42 = vpack.c.bf16 %v5516_v18, %v5516_v18 }
 0x3fe   :  { %5322 = vmatpush3.bf16.msra.mxu1 %v6936_v28  ;;  %v2538_v32 = vsub.f32 %v6778_v16, %v2500_v57  ;;  %2673 = vadd.xlane.f32.xlu1 %v2672_v13  ;;  %v2497_v12 = vpop.xlane.xlu1 %2496  ;;  %v5518_v54 = vpop.eup %5517  ;;  %v7255_v13 = vld [vmem:[#allocation29_spill] sm:$0xff] }
 0x3ff   :  { %v2537_v33 = vsub.f32 %v6774_v63, %v2497_v12  ;;  %5323 = vmatprep.subr.bf16.mxu1 %v7233_v2  ;;  %5325 = vmatprep.mubr.msk.bf16.mxu1 %vm5721_vm0, %v7233_v2  ;;  %v2684_v60 = vsel %vm2413_vm2, %v5518_v54, 0.0  ;;  %v2609_v23 = vsel %vm2413_vm2, %v7255_v13, 0.0 }
 0x400   :  { %v2598_v51 = vmul.f32 1.442695, %v2538_v32 }
 0x401   :  { %v2596_v8 = vmul.f32 1.442695, %v2537_v33 }
 0x402   :  { %5519 = vpow2.f32 %v2598_v51  ;;  %2679 = vadd.xlane.f32.xlu1 %v2678_v20  ;;  %v7047_v27 = vpop.f32.mrb[84].mxu1 }
 0x403   :  { %5521 = vpow2.f32 %v2596_v8  ;;  %v5151_v16 = vpop.f32.mrb[85].mxu1 }
 0x404   :  { %v2903_v28 = vpop.f32.mrb[86].mxu1 }
 0x405   :  { %v5152_v63 = vpop.f32.mrb[87].mxu1 }
 0x406   :  { %2685 = vadd.xlane.f32.xlu1 %v2684_v60 }
 0x40c   :  { %v5520_v4 = vpop.eup %5519 }
 0x40d   :  { %v7050_v19 = vpop.eup %5521  ;;  %v2506_v11 = vpop.xlane.xlu0 %2505  ;;  %v2690_v30 = vsel %vm2413_vm2, %v5520_v4, 0.0  ;;  %v2730_v43 = vpack.c.bf16 %v5520_v4, %v5520_v4 }
 0x40e   :  { %v2540_v55 = vsub.f32 %v6809_v52, %v2506_v11  ;;  %v2503_v34 = vpop.xlane.xlu1 %2502  ;;  %2691 = vadd.xlane.f32.xlu1 %v2690_v30  ;;  %v2687_v58 = vsel %vm2413_vm2, %v7050_v19, 0.0  ;;  %v2728_v52 = vpack.c.bf16 %v5518_v54, %v5518_v54  ;;  %v2729_v35 = vpack.c.bf16 %v7050_v19, %v7050_v19  ;;  %v7256_v54 = vld [vmem:[#allocation30_spill] sm:$0xff] }
 0x40f   :  { %v2539_v31 = vsub.f32 %v6805_v61, %v2503_v34  ;;  %2688 = vadd.xlane.f32.xlu0 %v2687_v58  ;;  %v2615_v16 = vsel %vm2413_vm2, %v7256_v54, 0.0 }
 0x410   :  { %v2602_v47 = vmul.f32 1.442695, %v2540_v55 }
 0x411   :  { %v2600_v40 = vmul.f32 1.442695, %v2539_v31  ;;  %v799_v41 = vpop.permute.xlu0 %798 }
 0x412   :  { %5523 = vpow2.f32 %v2602_v47  ;;  %5316 = vmatpush3.bf16.msra.mxu0 %v799_v41 }
 0x413   :  { %5525 = vpow2.f32 %v2600_v40  ;;  %5329 = vmatprep.subr.bf16.mxu0 %v7233_v2 }
 0x415   :  { %v805_v56 = vpop.permute.xlu0 %804  ;;  %5318 = vmatmul.mubr.msk.bf16.vlgmr.msra.gmra.mrb[132].mxu0 %vm2413_vm2, %v2726_v42 }
 0x416   :  { %5330 = vmatpush3.bf16.msra.mxu0 %v805_v56  ;;  %5333 = vmatprep.mubr.msk.bf16.mxu0 %vm5721_vm0, %v7233_v2 }
 0x417   :  { %5331 = vmatprep.subr.bf16.mxu0 %v7233_v2 }
 0x419   :  { %v807_v61 = vpop.permute.xlu0 %806 }
 0x41a   :  { %5332 = vmatpush3.bf16.msra.mxu0 %v807_v61 }
 0x41b   :  { %5345 = vmatprep.subr.bf16.mxu0 %v7233_v2 }
 0x41c   :  { %v5524_v24 = vpop.eup %5523  ;;  %v2509_v21 = vpop.xlane.xlu1 %2508 }
 0x41d   :  { %v7063_v25 = vpop.eup %5525  ;;  %v821_v5 = vpop.permute.xlu0 %820  ;;  %5334 = vmatmul.mubr.msk.bf16.vlgmr.msra.gmra.mrb[136].mxu0 %vm2413_vm2, %v2728_v52  ;;  %v2541_v44 = vsub.f32 %v6836_v38, %v2509_v21  ;;  %v2696_v14 = vsel %vm2413_vm2, %v5524_v24, 0.0  ;;  %v2606_v38 = vsel %vm2413_vm2, %v7253_v17, 0.0  ;;  %v2732_v36 = vpack.c.bf16 %v5524_v24, %v5524_v24 }
 0x41e   :  { %5346 = vmatpush3.bf16.msra.mxu0 %v821_v5  ;;  %2697 = vadd.xlane.f32.xlu1 %v2696_v14  ;;  %v2693_v1 = vsel %vm2413_vm2, %v7063_v25, 0.0  ;;  %v2731_v51 = vpack.c.bf16 %v7063_v25, %v7063_v25 }
 0x41f   :  { %v2604_v29 = vmul.f32 1.442695, %v2541_v44  ;;  %2694 = vadd.xlane.f32.xlu0 %v2693_v1  ;;  %5347 = vmatprep.subr.bf16.mxu0 %v7233_v2 }
 0x420   :  { %v803_v0 = vpop.permute.xlu1 %802  ;;  %5349 = vmatprep.mubr.msk.bf16.mxu0 %vm5721_vm0, %v7233_v2 }
 0x421   :  { %5527 = vpow2.f32 %v2604_v29  ;;  %v823_v48 = vpop.permute.xlu0 %822  ;;  %5324 = vmatpush3.bf16.msra.mxu1 %v803_v0  ;;  %v7075_v10 = vpop.f32.mrb[92].mxu0 }
 0x422   :  { %5348 = vmatpush3.bf16.msra.mxu0 %v823_v48  ;;  %2607 = vadd.xlane.f32.xlu1 %v2606_v38  ;;  %v5159_v3 = vpop.f32.mrb[93].mxu0 }
 0x423   :  { %v2946_v9 = vpop.f32.mrb[94].mxu0  ;;  %5337 = vmatprep.subr.bf16.mxu1 %v7233_v2  ;;  %5361 = vmatprep.subr.bf16.mxu0 %v7233_v2 }
 0x424   :  { %5326 = vmatmul.mubr.msk.bf16.vlgmr.msra.gmra.mrb[128].mxu1 %vm2413_vm2, %v2727_v37  ;;  %v809_v6 = vpop.permute.xlu1 %808  ;;  %v5160_v53 = vpop.f32.mrb[95].mxu0 }
 0x425   :  { %v829_v49 = vpop.permute.xlu0 %828  ;;  %5350 = vmatmul.mubr.msk.bf16.vlgmr.msra.gmra.mrb[140].mxu0 %vm2413_vm2, %v2730_v43  ;;  %5338 = vmatpush3.bf16.msra.mxu1 %v809_v6 }
 0x426   :  { %5362 = vmatpush3.bf16.msra.mxu0 %v829_v49  ;;  %2613 = vadd.xlane.f32.xlu1 %v2612_v50 }
 0x427   :  { %5339 = vmatprep.subr.bf16.mxu1 %v7233_v2  ;;  %5363 = vmatprep.subr.bf16.mxu0 %v7233_v2 }
 0x428   :  { %v811_v26 = vpop.permute.xlu1 %810  ;;  %5341 = vmatprep.mubr.msk.bf16.mxu1 %vm5721_vm0, %v7233_v2  ;;  %5365 = vmatprep.mubr.msk.bf16.mxu0 %vm5721_vm0, %v7233_v2 }
 0x429   :  { %v831_v46 = vpop.permute.xlu0 %830  ;;  %5340 = vmatpush3.bf16.msra.mxu1 %v811_v26 }
 0x42a   :  { %5364 = vmatpush3.bf16.msra.mxu0 %v831_v46  ;;  %5353 = vmatprep.subr.bf16.mxu1 %v7233_v2 }
 0x42b   :  { %v5528_v45 = vpop.eup %5527 }
 0x42c   :  { %5342 = vmatmul.mubr.msk.bf16.vlgmr.msra.gmra.mrb[132].mxu1 %vm2413_vm2, %v2729_v35  ;;  %v825_v39 = vpop.permute.xlu1 %824  ;;  %v2699_v22 = vsel %vm2413_vm2, %v5528_v45, 0.0  ;;  %v2733_v19 = vpack.c.bf16 %v5528_v45, %v5528_v45 }
 0x42d   :  { %5366 = vmatmul.mubr.msk.bf16.vlgmr.msra.gmra.mrb[144].mxu0 %vm2413_vm2, %v2732_v36  ;;  %2700 = vadd.xlane.f32.xlu0 %v2699_v22 }
 0x42e   :  { %5354 = vmatpush3.bf16.msra.mxu1 %v825_v39  ;;  %5357 = vmatprep.mubr.msk.bf16.mxu1 %vm5721_vm0, %v7233_v2 }
 0x42f   :  { %5355 = vmatprep.subr.bf16.mxu1 %v7233_v2 }
 0x430   :  { %v827_v57 = vpop.permute.xlu1 %826 }
 0x431   :  { %v3029_v18 = vpop.f32.mrb[96].mxu0  ;;  %2610 = vadd.xlane.f32.xlu0 %v2609_v23 }
 0x432   :  { %5356 = vmatpush3.bf16.msra.mxu1 %v827_v57  ;;  %v5175_v32 = vpop.f32.mrb[97].mxu0 }
 0x433   :  { %v7102_v12 = vpop.f32.mrb[88].mxu1  ;;  %v3032_v33 = vpop.f32.mrb[98].mxu0  ;;  %5369 = vmatprep.subr.bf16.mxu1 %v7233_v2 }
 0x434   :  { %v5167_v8 = vpop.f32.mrb[89].mxu1  ;;  %v5176_v20 = vpop.f32.mrb[99].mxu0 }
 0x435   :  { %v2989_v28 = vpop.f32.mrb[90].mxu1  ;;  %5358 = vmatmul.mubr.msk.bf16.vlgmr.msra.gmra.mrb[136].mxu1 %vm2413_vm2, %v2731_v51  ;;  %v833_v60 = vpop.permute.xlu1 %832  ;;  %2616 = vadd.xlane.f32.xlu0 %v2615_v16 }
 0x436   :  { %v5168_v63 = vpop.f32.mrb[91].mxu1  ;;  %5370 = vmatpush3.bf16.msra.mxu1 %v833_v60  ;;  %5373 = vmatprep.mubr.msk.bf16.mxu1 %vm5721_vm0, %v7233_v2 }
 0x437   :  { %5371 = vmatprep.subr.bf16.mxu1 %v7233_v2 }
 0x439   :  { %v835_v4 = vpop.permute.xlu1 %834 }
 0x43a   :  { %5372 = vmatpush3.bf16.msra.mxu1 %v835_v4 }
 0x43d   :  { %5374 = vmatmul.mubr.msk.bf16.vlgmr.msra.gmra.mrb[140].mxu1 %vm2413_vm2, %v2733_v19 }
 0x441   :  { %v3072_v11 = vpop.f32.mrb[92].mxu1 }
 0x442   :  { %v7114_v30 = vpop.f32.mrb[100].mxu0  ;;  %v5183_v55 = vpop.f32.mrb[93].mxu1 }
 0x443   :  { %v5191_v34 = vpop.f32.mrb[101].mxu0  ;;  %v3075_v58 = vpop.f32.mrb[94].mxu1 }
 0x444   :  { %v3118_v31 = vpop.f32.mrb[102].mxu0  ;;  %v5184_v47 = vpop.f32.mrb[95].mxu1 }
 0x445   :  { %v5192_v40 = vpop.f32.mrb[103].mxu0 }
 0x451   :  { %v3158_v41 = vpop.f32.mrb[96].mxu1 }
 0x452   :  { %v7116_v42 = vpop.f32.mrb[104].mxu0  ;;  %v5199_v56 = vpop.f32.mrb[97].mxu1 }
 0x453   :  { %v5207_v61 = vpop.f32.mrb[105].mxu0  ;;  %v3161_v2 = vpop.f32.mrb[98].mxu1 }
 0x454   :  { %v3204_v52 = vpop.f32.mrb[106].mxu0  ;;  %v5200_v24 = vpop.f32.mrb[99].mxu1 }
 0x455   :  { %v5208_v21 = vpop.f32.mrb[107].mxu0 }
 0x45a   :  { %v2620_v25 = vpop.xlane.xlu0 %2619 }
 0x45e   :  { %v2626_v5 = vpop.xlane.xlu0 %2625 }
 0x45f   :  { %5529 = vrcp.f32 %v2626_v5 }
 0x461   :  { %v3244_v44 = vpop.f32.mrb[100].mxu1 }
 0x462   :  { %v2629_v14 = vpop.xlane.xlu0 %2628  ;;  %v5215_v1 = vpop.f32.mrb[101].mxu1 }
 0x463   :  { %5531 = vrcp.f32 %v2629_v14  ;;  %v3247_v29 = vpop.f32.mrb[102].mxu1 }
 0x464   :  { %v5216_v0 = vpop.f32.mrb[103].mxu1  ;;  %5533 = vrcp.f32 %v2620_v25 }
 0x465   :  { %v3287_v48 = vpop.f32.mrb[108].mxu0 }
 0x466   :  { %v2635_v17 = vpop.xlane.xlu0 %2634  ;;  %v5223_v38 = vpop.f32.mrb[109].mxu0 }
 0x467   :  { %v3290_v3 = vpop.f32.mrb[110].mxu0 }
 0x468   :  { %v5224_v37 = vpop.f32.mrb[111].mxu0 }
 0x469   :  { %v5530_v43 = vpop.eup %5529 }
 0x46a   :  { %v2623_v9 = vpop.xlane.xlu1 %2622  ;;  %v2641_v6 = vpop.xlane.xlu0 %2640  ;;  %v4148_v7 = vmul.f32 %v5530_v43, %v3029_v18 }
 0x46b   :  { %5535 = vrcp.f32 %v2623_v9 }
 0x46c   :  { %5537 = vrcp.f32 %v2635_v17 }
 0x46d   :  { %v5532_v53 = vpop.eup %5531 }
 0x46e   :  { %v2632_v49 = vpop.xlane.xlu1 %2631  ;;  %v4149_v50 = vmul.f32 %v5532_v53, %v3072_v11  ;;  %v2647_v46 = vpop.xlane.xlu0 %2646 }
 0x46f   :  { %5539 = vrcp.f32 %v2632_v49  ;;  %v5534_v57 = vpop.eup %5533 }
 0x470   :  { %v4620_v26 = vpack.c.bf16 %v4149_v50, %v4148_v7  ;;  %5541 = vrcp.f32 %v2641_v6  ;;  %v4146_v8 = vmul.f32 %v5534_v57, %v7075_v10 }
 0x471   :  { %v3373_v35 = vpop.f32.mrb[112].mxu0 }
 0x472   :  { %v3330_v45 = vpop.f32.mrb[104].mxu1  ;;  %4228 = vrot.lane.b32.xlu0 %v4620_v26, %s5727_s16  ;;  %v5239_v36 = vpop.f32.mrb[113].mxu0 }
 0x473   :  { %v2638_v39 = vpop.xlane.xlu1 %2637  ;;  %v5231_v22 = vpop.f32.mrb[105].mxu1 }
 0x474   :  { %5543 = vrcp.f32 %v2638_v39  ;;  %v3333_v13 = vpop.f32.mrb[106].mxu1  ;;  %v3376_v23 = vpop.f32.mrb[114].mxu0 }
 0x475   :  { %v5232_v32 = vpop.f32.mrb[107].mxu1  ;;  %v5536_v33 = vpop.eup %5535  ;;  %5545 = vrcp.f32 %v2647_v46 }
 0x476   :  { %v5240_v18 = vpop.f32.mrb[115].mxu0  ;;  %v4147_v20 = vmul.f32 %v5536_v33, %v7102_v12  ;;  %v5538_v54 = vpop.eup %5537 }
 0x477   :  { %v2644_v51 = vpop.xlane.xlu1 %2643  ;;  %v2653_v16 = vpop.xlane.xlu0 %2652  ;;  %v4151_v19 = vmul.f32 %v5538_v54, %v3158_v41 }
 0x478   :  { %5547 = vrcp.f32 %v2644_v51  ;;  %v4619_v28 = vpack.c.bf16 %v4147_v20, %v4146_v8 }
 0x479   :  { %v5540_v60 = vpop.eup %5539  ;;  %5549 = vrcp.f32 %v2653_v16 }
 0x47a   :  { %4226 = vrot.lane.b32.xlu1 %v4619_v28, %s5727_s16  ;;  %v4150_v4 = vmul.f32 %v5540_v60, %v7114_v30  ;;  %v5542_v11 = vpop.eup %5541 }
 0x47b   :  { %v2650_v63 = vpop.xlane.xlu1 %2649  ;;  %v4153_v12 = vmul.f32 %v5542_v11, %v3244_v44 }
 0x47c   :  { %5551 = vrcp.f32 %v2650_v63  ;;  %v4621_v55 = vpack.c.bf16 %v4151_v19, %v4150_v4 }
 0x47e   :  { %v5544_v34 = vpop.eup %5543  ;;  %4240 = vrot.lane.b32.xlu1 %v4621_v55, %s5726_s15 }
 0x47f   :  { %v4152_v10 = vmul.f32 %v5544_v34, %v7116_v42  ;;  %v5546_v58 = vpop.eup %5545  ;;  %v2656_v0 = vpop.xlane.xlu1 %2655 }
 0x480   :  { %v4155_v56 = vmul.f32 %v5546_v58, %v3330_v45  ;;  %5553 = vrcp.f32 %v2656_v0 }
 0x481   :  { %v4622_v31 = vpack.c.bf16 %v4153_v12, %v4152_v10 }
 0x482   :  { %v5548_v47 = vpop.eup %5547  ;;  %v3459_v40 = vpop.f32.mrb[116].mxu0 }
 0x483   :  { %v3416_v61 = vpop.f32.mrb[108].mxu1  ;;  %4242 = vrot.lane.b32.xlu1 %v4622_v31, %s5726_s15  ;;  %v4154_v2 = vmul.f32 %v5548_v47, %v3287_v48  ;;  %v5550_v41 = vpop.eup %5549 }
 0x484   :  { %v5247_v30 = vpop.f32.mrb[109].mxu1  ;;  %v5255_v52 = vpop.f32.mrb[117].mxu0  ;;  %v4157_v42 = vmul.f32 %v5550_v41, %v3416_v61 }
 0x485   :  { %v3419_v24 = vpop.f32.mrb[110].mxu1  ;;  %v4623_v21 = vpack.c.bf16 %v4155_v56, %v4154_v2  ;;  %v3462_v5 = vpop.f32.mrb[118].mxu0 }
 0x486   :  { %v5552_v25 = vpop.eup %5551  ;;  %v5248_v14 = vpop.f32.mrb[111].mxu1 }
 0x487   :  { %v4156_v1 = vmul.f32 %v5552_v25, %v3373_v35  ;;  %v5256_v44 = vpop.f32.mrb[119].mxu0  ;;  %4254 = vrot.lane.b32.xlu0 %v4623_v21, %s5725_s14  ;;  %v2662_v17 = vpop.xlane.xlu1 %2661  ;;  %v5457_v21 = vld [vmem:[#allocation8] sm:$0xff]   ;;  %v5458_v25 = vld [vmem:[#allocation8 + $0x8] sm:$0xff]  }
 0x488   :  { %v2659_v48 = vpop.xlane.xlu0 %2658  ;;  %5377 = vmatprep.subr.bf16.mxu0 %v5457_v21 }
 0x489   :  { %v4624_v29 = vpack.c.bf16 %v4157_v42, %v4156_v1  ;;  %5555 = vrcp.f32 %v2659_v48  ;;  %5378 = vmatpush3.bf16.msra.mxu0 %v5457_v21 }
 0x48a   :  { %v5554_v46 = vpop.eup %5553  ;;  %5379 = vmatprep.subr.bf16.mxu0 %v5458_v25 }
 0x48b   :  { %4256 = vrot.lane.b32.xlu1 %v4624_v29, %s5725_s14  ;;  %v2668_v38 = vpop.xlane.xlu1 %2667  ;;  %v4158_v13 = vmul.f32 %v5554_v46, %v3459_v40 }
 0x48c   :  { %v2665_v37 = vpop.xlane.xlu0 %2664 }
 0x48d   :  { %5557 = vrcp.f32 %v2665_v37  ;;  %5380 = vmatpush3.bf16.msra.mxu0 %v5458_v25 }
 0x48e   :  { %5559 = vrcp.f32 %v2662_v17 }
 0x48f   :  { %v2674_v3 = vpop.xlane.xlu1 %2673 }
 0x490   :  { %v2671_v43 = vpop.xlane.xlu0 %2670 }
 0x491   :  { %5561 = vrcp.f32 %v2671_v43 }
 0x492   :  { %5563 = vrcp.f32 %v2668_v38 }
 0x493   :  { %v7128_v9 = vpop.xlane.xlu1 %2679  ;;  %v5556_v39 = vpop.eup %5555 }
 0x494   :  { %v2677_v53 = vpop.xlane.xlu0 %2676 }
 0x497   :  { %v7130_v6 = vpop.xlane.xlu1 %2685  ;;  %v5558_v28 = vpop.eup %5557 }
 0x498   :  { %v7134_v7 = vpop.xlane.xlu0 %2682  ;;  %v5560_v4 = vpop.eup %5559 }
 0x49b   :  { %v7132_v49 = vpop.xlane.xlu1 %2691  ;;  %v5562_v61 = vpop.eup %5561 }
 0x49c   :  { %v7138_v26 = vpop.xlane.xlu0 %2688  ;;  %v5564_v2 = vpop.eup %5563 }
 0x4ab   :  { %v7136_v50 = vpop.xlane.xlu1 %2697 }
 0x4ac   :  { %v7140_v35 = vpop.xlane.xlu0 %2694 }
 0x4af   :  { %v2608_v45 = vpop.xlane.xlu1 %2607 }
 0x4b0   :  { %5565 = vrcp.f32 %v2608_v45 }
 0x4b3   :  { %v2614_v16 = vpop.xlane.xlu1 %2613 }
 0x4b7   :  { %v3545_v36 = vpop.f32.mrb[120].mxu0 }
 0x4b8   :  { %v3502_v22 = vpop.f32.mrb[112].mxu1  ;;  %v5271_v57 = vpop.f32.mrb[121].mxu0  ;;  %v4160_v55 = vmul.f32 %v5560_v4, %v3545_v36 }
 0x4b9   :  { %v4159_v23 = vmul.f32 %v5556_v39, %v3502_v22  ;;  %v5263_v32 = vpop.f32.mrb[113].mxu1  ;;  %v3548_v33 = vpop.f32.mrb[122].mxu0 }
 0x4ba   :  { %v3505_v18 = vpop.f32.mrb[114].mxu1  ;;  %v5272_v51 = vpop.f32.mrb[123].mxu0 }
 0x4bb   :  { %v4625_v8 = vpack.c.bf16 %v4159_v23, %v4158_v13  ;;  %v5264_v20 = vpop.f32.mrb[115].mxu1  ;;  %v7142_v54 = vpop.xlane.xlu0 %2700 }
 0x4bc   :  { %v5566_v41 = vpop.eup %5565  ;;  %v5460_v20 = vld [vmem:[#allocation8 + $0x18] sm:$0xff]  }
 0x4bd   :  { %4268 = vrot.lane.b32.xlu0 %v4625_v8, %s5713_s27  ;;  %v7147_v48 = vmul.f32 %v5566_v41, %v6954_v62 }
 0x4bf   :  { %v3631_v60 = vpop.f32.mrb[124].mxu0  ;;  %v2611_v63 = vpop.xlane.xlu0 %2610 }
 0x4c0   :  { %v3588_v19 = vpop.f32.mrb[116].mxu1  ;;  %5567 = vrcp.f32 %v2611_v63  ;;  %v5287_v11 = vpop.f32.mrb[125].mxu0  ;;  %v4162_v5 = vmul.f32 %v5564_v2, %v3631_v60 }
 0x4c1   :  { %v4161_v34 = vmul.f32 %v5558_v28, %v3588_v19  ;;  %v5279_v10 = vpop.f32.mrb[117].mxu1  ;;  %v3634_v12 = vpop.f32.mrb[126].mxu0  ;;  %5569 = vrcp.f32 %v2614_v16 }
 0x4c2   :  { %v3591_v58 = vpop.f32.mrb[118].mxu1  ;;  %v5288_v31 = vpop.f32.mrb[127].mxu0 }
 0x4c3   :  { %v4626_v47 = vpack.c.bf16 %v4161_v34, %v4160_v55  ;;  %v5280_v40 = vpop.f32.mrb[119].mxu1  ;;  %v2617_v56 = vpop.xlane.xlu0 %2616  ;;  %v5462_v55 = vld [vmem:[#allocation8 + $0x28] sm:$0xff]  }
 0x4c4   :  { %5571 = vrcp.f32 %v2617_v56 }
 0x4c5   :  { %5573 = vrcp.f32 %v2677_v53  ;;  %4270 = vrot.lane.b32.xlu1 %v4626_v47, %s5713_s27  ;;  %s5728_s27 = smov [#allocation10]  }
 0x4c6   :  { %5575 = vrcp.f32 %v2674_v3  ;;  %s4473_s17 = sshll.u32 %s5728_s27, 4  ;;  %s4474_s17 = int_to_ptr.vmem [resolvable:$true] %s4473_s17 }
 0x4c7   :  { %v3717_v30 = vpop.f32.mrb[128].mxu0  ;;  %5577 = vrcp.f32 %v7134_v7  ;;  %v5461_v7 = vld [vmem:[#allocation8 + $0x20] sm:$0xff]   ;;  %s5681_s19 = scalar_lea.vmem %s4474_s17, 512  ;;  %p5686_p5 = scmp.lt.s32.totalorder %s4474_s17, %s4474_s17 }
 0x4c8   :  { %v3674_v52 = vpop.f32.mrb[120].mxu1  ;;  %v5303_v24 = vpop.f32.mrb[129].mxu0  ;;  %5579 = vrcp.f32 %v7128_v9  ;;  %p5682_p4 = scmp.ne.s32.totalorder %s4474_s17, %s5681_s19  ;;  %p5687_p6 = scmp.lt.s32.totalorder %s5681_s19, %s5681_s19 }
 0x4c9   :  { %v4163_v14 = vmul.f32 %v5562_v61, %v3674_v52  ;;  %v5295_v1 = vpop.f32.mrb[121].mxu1  ;;  %v3720_v42 = vpop.f32.mrb[130].mxu0  ;;  %5581 = vrcp.f32 %v7130_v6 }
 0x4ca   :  { %v5568_v44 = vpop.eup %5567  ;;  %v3677_v29 = vpop.f32.mrb[122].mxu1  ;;  %5583 = vrcp.f32 %v7138_v26  ;;  %p5688_p7 = por %p5687_p6, %p5686_p5 }
 0x4cb   :  { %v5304_v0 = vpop.f32.mrb[131].mxu0  ;;  %v4627_v17 = vpack.c.bf16 %v4163_v14, %v4162_v5  ;;  %v5296_v38 = vpop.f32.mrb[123].mxu1  ;;  %v7150_v3 = vmul.f32 %v5568_v44, %v7031_v15  ;;  %5585 = vrcp.f32 %v7132_v49  ;;  %v5464_v14 = vld [vmem:[#allocation8 + $0x38] sm:$0xff]  }
 0x4cc   :  { %v5570_v37 = vpop.eup %5569  ;;  %5587 = vrcp.f32 %v7140_v35  ;;  %p5689_p8 = pnand %p5688_p7, %p5682_p4 }
 0x4cd   :  { %4282 = vrot.lane.b32.xlu0 %v4627_v17, %s5724_s13  ;;  %v4617_v43 = vpack.c.bf16 %v7150_v3, %v7147_v48  ;;  %v7159_v36 = vmul.f32 %v5570_v37, %v6963_v59  ;;  %v5459_v59 = vld [vmem:[#allocation8 + $0x10] sm:$0xff]   ;;  %5589 = vrcp.f32 %v7136_v50 }
 0x4ce   :  { %v5572_v53 = vpop.eup %5571  ;;  %5381 = vmatprep.subr.bf16.mxu0 %v5459_v59  ;;  %5591 = vrcp.f32 %v7142_v54 }
 0x4cf   :  { %v5574_v46 = vpop.eup %5573  ;;  %v7156_v45 = vmul.f32 %v5572_v53, %v7047_v27  ;;  %5382 = vmatpush3.bf16.msra.mxu0 %v5459_v59 }
 0x4d0   :  { %v5576_v62 = vpop.eup %5575  ;;  %v3760_v15 = vpop.f32.mrb[124].mxu1  ;;  %5383 = vmatprep.subr.bf16.mxu0 %v5460_v20 }
 0x4d1   :  { %v4164_v39 = vmul.f32 %v5576_v62, %v3717_v30  ;;  %v4165_v22 = vmul.f32 %v5574_v46, %v3760_v15  ;;  %v5311_v57 = vpop.f32.mrb[125].mxu1  ;;  %v4618_v13 = vpack.c.bf16 %v7156_v45, %v7159_v36  ;;  %v5578_v4 = vpop.eup %5577  ;;  %v5463_v30 = vld [vmem:[#allocation8 + $0x30] sm:$0xff]  }
 0x4d2   :  { %v3763_v23 = vpop.f32.mrb[126].mxu1  ;;  %v5580_v19 = vpop.eup %5579 }
 0x4d3   :  { %v4628_v32 = vpack.c.bf16 %v4165_v22, %v4164_v39  ;;  %v5312_v33 = vpop.f32.mrb[127].mxu1  ;;  %5384 = vmatpush3.bf16.msra.mxu0 %v5460_v20  ;;  %v5582_v26 = vpop.eup %5581 }
 0x4d4   :  { %5385 = vmatprep.subr.bf16.mxu0 %v5461_v7  ;;  %v5584_v61 = vpop.eup %5583 }
 0x4d5   :  { %4284 = vrot.lane.b32.xlu1 %v4628_v32, %s5724_s13  ;;  %v5586_v35 = vpop.eup %5585 }
 0x4d6   :  { %v5588_v29 = vpop.eup %5587 }
 0x4d7   :  { %5386 = vmatpush3.bf16.msra.mxu0 %v5461_v7  ;;  %v5590_v15 = vpop.eup %5589 }
 0x4d8   :  { %5387 = vmatprep.subr.bf16.mxu0 %v5462_v55  ;;  %v5592_v39 = vpop.eup %5591 }
 0x4db   :  { %5388 = vmatpush3.bf16.msra.mxu0 %v5462_v55 }
 0x4dc   :  { %5389 = vmatprep.subr.bf16.mxu0 %v5463_v30 }
 0x4df   :  { %5390 = vmatpush3.bf16.msra.mxu0 %v5463_v30 }
 0x4e0   :  { %5391 = vmatprep.subr.bf16.mxu0 %v5464_v14 }
 0x4e3   :  { %5392 = vmatpush3.bf16.msra.mxu0 %v5464_v14 }
 0x4e8   :  { %v3803_v18 = vpop.f32.mrb[132].mxu0 }
 0x4e9   :  { %v5319_v27 = vpop.f32.mrb[133].mxu0  ;;  %v4166_v9 = vmul.f32 %v5580_v19, %v3803_v18 }
 0x4ea   :  { %v3806_v51 = vpop.f32.mrb[134].mxu0  ;;  %v4229_v27 = vpop.permute.xlu0 %4228 }
 0x4eb   :  { %v5320_v8 = vpop.f32.mrb[135].mxu0  ;;  %v4319_v3 = vsel %vm844_vm1, %v4618_v13, %v4229_v27 }
 0x4ec   :  { %v4227_v18 = vpop.permute.xlu1 %4226 }
 0x4f0   :  { %v3889_v16 = vpop.f32.mrb[136].mxu0  ;;  %v4241_v51 = vpop.permute.xlu1 %4240 }
 0x4f1   :  { %v5335_v28 = vpop.f32.mrb[137].mxu0  ;;  %v4168_v41 = vmul.f32 %v5582_v26, %v3889_v16 }
 0x4f2   :  { %v3892_v60 = vpop.f32.mrb[138].mxu0 }
 0x4f3   :  { %v5336_v63 = vpop.f32.mrb[139].mxu0  ;;  %v4316_v60 = vsel %vm844_vm1, %v4617_v43, %v4227_v18 }
 0x4f4   :  { %v4321_v63 = vsel %vm2413_vm2, %v4316_v60, %v4241_v51 }
 0x4f5   :  { %v4243_v59 = vpop.permute.xlu1 %4242 }
 0x4f6   :  { %v4323_v43 = vsel %vm2413_vm2, %v4319_v3, %v4243_v59 }
 0x4f7   :  { %v3846_v11 = vpop.f32.mrb[128].mxu1 }
 0x4f8   :  { %v4167_v34 = vmul.f32 %v5578_v4, %v3846_v11  ;;  %v3975_v10 = vpop.f32.mrb[140].mxu0  ;;  %v5327_v12 = vpop.f32.mrb[129].mxu1 }
 0x4f9   :  { %v5351_v58 = vpop.f32.mrb[141].mxu0  ;;  %v3849_v47 = vpop.f32.mrb[130].mxu1  ;;  %v4170_v17 = vmul.f32 %v5586_v35, %v3975_v10 }
 0x4fa   :  { %v4629_v31 = vpack.c.bf16 %v4167_v34, %v4166_v9  ;;  %v3978_v40 = vpop.f32.mrb[142].mxu0  ;;  %v5328_v56 = vpop.f32.mrb[131].mxu1 }
 0x4fb   :  { %v5352_v6 = vpop.f32.mrb[143].mxu0  ;;  %v4255_v8 = vpop.permute.xlu0 %4254 }
 0x4fc   :  { %4296 = vrot.lane.b32.xlu0 %v4629_v31, %s5723_s28  ;;  %v4326_v11 = vsel %vm4324_vm3, %v4321_v63, %v4255_v8 }
 0x4fd   :  { %v4257_v16 = vpop.permute.xlu1 %4256 }
 0x4fe   :  { %v4328_v58 = vsel %vm4324_vm3, %v4323_v43, %v4257_v16 }
 0x4ff   :  { %v3932_v2 = vpop.f32.mrb[132].mxu1 }
 0x500   :  { %v4169_v52 = vmul.f32 %v5584_v61, %v3932_v2  ;;  %v4061_v24 = vpop.f32.mrb[144].mxu0  ;;  %v5343_v21 = vpop.f32.mrb[133].mxu1 }
 0x501   :  { %v5367_v25 = vpop.f32.mrb[145].mxu0  ;;  %v3935_v5 = vpop.f32.mrb[134].mxu1  ;;  %v4172_v57 = vmul.f32 %v5590_v15, %v4061_v24 }
 0x502   :  { %v4630_v1 = vpack.c.bf16 %v4169_v52, %v4168_v41  ;;  %v4064_v42 = vpop.f32.mrb[146].mxu0  ;;  %v5344_v44 = vpop.f32.mrb[135].mxu1 }
 0x503   :  { %v5368_v49 = vpop.f32.mrb[147].mxu0 }
 0x504   :  { %4298 = vrot.lane.b32.xlu1 %v4630_v1, %s5723_s28 }
 0x508   :  { %v4018_v0 = vpop.f32.mrb[136].mxu1 }
 0x509   :  { %v4171_v38 = vmul.f32 %v5588_v29, %v4018_v0  ;;  %v5359_v37 = vpop.f32.mrb[137].mxu1 }
 0x50a   :  { %v4021_v53 = vpop.f32.mrb[138].mxu1 }
 0x50b   :  { %v4631_v46 = vpack.c.bf16 %v4171_v38, %v4170_v17  ;;  %v5360_v62 = vpop.f32.mrb[139].mxu1 }
 0x50d   :  { %4310 = vrot.lane.b32.xlu0 %v4631_v46, %s5722_s3 }
 0x510   :  { %v4104_v22 = vpop.f32.mrb[140].mxu1 }
 0x511   :  { %v4173_v23 = vmul.f32 %v5592_v39, %v4104_v22  ;;  %v5375_v50 = vpop.f32.mrb[141].mxu1 }
 0x512   :  { %v4107_v32 = vpop.f32.mrb[142].mxu1 }
 0x513   :  { %v4632_v54 = vpack.c.bf16 %v4173_v23, %v4172_v57  ;;  %v5376_v33 = vpop.f32.mrb[143].mxu1 }
 0x515   :  { %4312 = vrot.lane.b32.xlu1 %v4632_v54, %s5722_s3 }
 0x52f   :  { %v4269_v20 = vpop.permute.xlu0 %4268 }
 0x530   :  { %v4331_v7 = vsel %vm4329_vm4, %v4326_v11, %v4269_v20 }
 0x537   :  { %v4271_v4 = vpop.permute.xlu1 %4270 }
 0x538   :  { %v4333_v31 = vsel %vm4329_vm4, %v4328_v58, %v4271_v4 }
 0x53f   :  { %v4283_v28 = vpop.permute.xlu0 %4282 }
 0x540   :  { %v4336_v55 = vsel %vm4334_vm5, %v4331_v7, %v4283_v28 }
 0x547   :  { %v4285_v9 = vpop.permute.xlu1 %4284 }
 0x548   :  { %v4338_v47 = vsel %vm4334_vm5, %v4333_v31, %v4285_v9 }
 0x56e   :  { %v4297_v19 = vpop.permute.xlu0 %4296 }
 0x56f   :  { %v4341_v34 = vsel %vm4339_vm6, %v4336_v55, %v4297_v19 }
 0x576   :  { %v4299_v12 = vpop.permute.xlu1 %4298 }
 0x577   :  { %v4343_v40 = vsel %vm4339_vm6, %v4338_v47, %v4299_v12 }
 0x57f   :  { %v4311_v10 = vpop.permute.xlu0 %4310 }
 0x580   :  { %v4346_v48 = vsel %vm4344_vm7, %v4341_v34, %v4311_v10 }
 0x581   :  { %5393 = vmatprep.mubr.bf16.mxu0 %v4346_v48 }
 0x587   :  { %v4313_v56 = vpop.permute.xlu1 %4312 }
 0x588   :  { %v4349_v6 = vsel %vm4344_vm7, %v4343_v40, %v4313_v56 }
 0x589   :  { %5394 = vmatmul.mubr.bf16.vlgmr.msra.gmra.mrb[148].mxu0 %v4349_v6 }
 0x65c   :  { %v5395_v26 = vpop.f32.mrb[148].mxu0 }
 0x65d   :  { %4466 = vst [vmem:[#allocation10 + $0x10] sm:$0xff] %v5395_v26  ;;  %v4449_v45 = vpop.f32.mrb[149].mxu0 }
 0x65e   :  { %4464 = vst [vmem:[#allocation10] sm:$0xff] %v4449_v45  ;;  %v5396_v36 = vpop.f32.mrb[150].mxu0 }
 0x65f   :  { %4467 = vst [vmem:[#allocation10 + $0x18] sm:$0xff] %v5396_v36  ;;  %v4452_v13 = vpop.f32.mrb[151].mxu0 }
 0x660   :  { %4465 = vst [vmem:[#allocation10 + $0x8] sm:$0xff] %v4452_v13 }
 0x661   :  { %5692 = shalt.err (!%p5689_p8)
}
 0x662   :  { %s5693_s22 = scalar_lea.hbm %s7211_s4, 512 }
 0x663   :  { %p5694_p9 = scmp.ne.s32.totalorder %s7211_s4, %s5693_s22  ;;  %p5697_p10 = scmp.lt.u32.totalorder %s5693_s22, %s7211_s4 }
 0x665   :  { %p5699_p11 = pnand %p5697_p10, %p5694_p9 }
 0x667   :  { %5702 = shalt.err (!%p5699_p11)
}
 0x668   :  { %4479 = dma.vmem_to_hbm [thread:$0]  %s4474_s17, 512, %s7211_s4, [#allocation4], %s5716_s0, %s5716_s0, %s5717_s18  }
 0x669   :  { %5709 = dma.done.wait [#allocation4], 512  }
 0x66a   :  { %5710 = vsyncadd [#allocation4], 4294966784 }
 0x66b   :  { %4483 = vsyncpa [#allocation3], 1 }
 0x66c   :  { %4484 = vsyncpa [#allocation6], 1 }
 0x66d   :  { %4485 = vsyncpa [#allocation9], 1 }
 0x66e   :  { %4486 = vsyncpa [#allocation4], 1 }

</bundles_post_ra>
